<compile_context>
chip_gen: v7x
topology: tpu7x:2x2x1
jax: 0.10.0
libtpu: 0.0.40
codegen_flags: <defaults>
</compile_context>

<pallas_src>
import functools

import jax
import jax.numpy as jnp
from jax.experimental import pallas as pl
from jax.experimental.pallas import tpu as pltpu

HEADS = 4          # GATConv(output_dim, output_dim, heads=4)
NEG_SLOPE = 0.2    # GATConv default LeakyReLU negative_slope
LANE = 128
MASK_NEG = -1e30


def _leaky_relu(x):
    return jnp.where(x > 0, x, NEG_SLOPE * x)


def professional_gnn_kernel(
    # graph-derived inputs
    x_ref, a_norm_ref, bias_stk_ref, g_src_ref, g_dst_ref,
    # hoisted structural constants
    s_rep_ref, s_sum_ref, i_rep_ref, m_blk_ref, mean_blk_ref,
    # GCN weights
    w1_ref, b1_ref, w2_ref, b2_ref, w3_ref, b3_ref,
    # GAT weights
    w_gat_ref, a_src_blk_ref, a_dst_blk_ref, b_gat_ref,
    # predictor weights
    w_p1s_ref, w_p1d_ref, b_p1_ref, w_p2_ref, b_p2_ref,
    # outputs (lane-dense, 128-wide)
    emb_out_ref, pred_out_ref,
    *, n_nodes, n_edges, out_dim,
):
    f32 = jnp.float32
    x = x_ref[...]              # [N, F_in]
    a_norm = a_norm_ref[...]    # [N, N]  D^-1/2 (A+I) D^-1/2

    # ---------------- GCN stack (3 layers) ------------------------------
    h = jnp.dot(x, w1_ref[...], preferred_element_type=f32)
    h = jnp.maximum(jnp.dot(a_norm, h, preferred_element_type=f32) + b1_ref[...], 0.0)
    # dropout: identity in eval mode
    h = jnp.dot(h, w2_ref[...], preferred_element_type=f32)
    h = jnp.maximum(jnp.dot(a_norm, h, preferred_element_type=f32) + b2_ref[...], 0.0)
    h = jnp.dot(h, w3_ref[...], preferred_element_type=f32)
    h = jnp.dot(a_norm, h, preferred_element_type=f32) + b3_ref[...]   # [N, O]

    # ---------------- GATConv(O, O, heads=4), heads stacked on lanes ----
    s_rep = s_rep_ref[...]                                             # [Hh, Hh*N]
    xw = jnp.dot(h, w_gat_ref[...], preferred_element_type=f32)        # [N, Hh*O]

    a_dst = jnp.dot(xw, a_dst_blk_ref[...], preferred_element_type=f32)  # [N, Hh]
    a_src = jnp.dot(xw, a_src_blk_ref[...], preferred_element_type=f32)  # [N, Hh]

    # e[i, h*N+j] = leaky_relu(a_dst[i,h] + a_src[j,h]) + mask_bias[i,j]
    dst_part = jnp.dot(a_dst, s_rep, preferred_element_type=f32)       # [N, Hh*N]
    q = jnp.dot(a_src, s_rep, preferred_element_type=f32) * i_rep_ref[...]
    src_row = jnp.sum(q, axis=0, keepdims=True)                        # [1, Hh*N]
    e = _leaky_relu(dst_part + src_row) + bias_stk_ref[...]            # [N, Hh*N]

    # segmented (per-head) row max for a stable softmax
    m = jnp.concatenate(
        [jnp.max(e[:, hh * n_nodes:(hh + 1) * n_nodes], axis=1, keepdims=True)
         for hh in range(HEADS)], axis=1)                              # [N, Hh]
    p = jnp.exp(e - jnp.dot(m, s_rep, preferred_element_type=f32))     # masked -> 0
    denom = jnp.dot(p, s_sum_ref[...], preferred_element_type=f32)     # [N, Hh]
    inv = pl.reciprocal(denom, approx=True)
    attn = p * jnp.dot(inv, s_rep, preferred_element_type=f32)         # [N, Hh*N]

    # single block-diagonal aggregation matmul for all heads
    xw_blk = jnp.concatenate([xw] * HEADS, axis=0) * m_blk_ref[...]    # [Hh*N, Hh*O]
    out_heads = jnp.dot(attn, xw_blk, preferred_element_type=f32)      # [N, Hh*O]
    emb = (jnp.dot(out_heads, mean_blk_ref[...], preferred_element_type=f32)
           + b_gat_ref[...])                                           # [N, O]

    # ---------------- edge predictor: Linear(2O->H) ReLU Linear(H->1) Sig
    zs = jnp.dot(emb, w_p1s_ref[...], preferred_element_type=f32)      # [N, H]
    zd = jnp.dot(emb, w_p1d_ref[...], preferred_element_type=f32)      # [N, H]
    hc = jnp.maximum(
        jnp.dot(g_src_ref[...], zs, preferred_element_type=f32)
        + jnp.dot(g_dst_ref[...], zd, preferred_element_type=f32)
        + b_p1_ref[...], 0.0)                                          # [E, H]
    logit = jnp.dot(hc, w_p2_ref[...], preferred_element_type=f32) + b_p2_ref[...]
    pred = jax.nn.sigmoid(logit)                                       # [E, 1]

    # ---------------- lane-dense (128-wide) output slabs ----------------
    emb_out_ref[...] = jnp.concatenate(
        [emb, jnp.zeros((n_nodes, LANE - out_dim), f32)], axis=1)
    pred_out_ref[...] = jnp.concatenate(
        [pred, jnp.zeros((n_edges, LANE - 1), f32)], axis=1)


def professional_gnn_forward(x, edge_index, params, *, hidden_dim, output_dim):
    f32 = jnp.float32
    n = x.shape[0]
    e = edge_index.shape[1]
    heads = HEADS
    src, dst = edge_index[0], edge_index[1]

    # dense adjacency (rows = destination, cols = source) with self-loops
    ahat = jnp.zeros((n, n), f32).at[dst, src].set(1.0)
    ahat = ahat.at[jnp.arange(n), jnp.arange(n)].set(1.0)

    # GCN symmetric normalization D^-1/2 (A+I) D^-1/2
    deg = jnp.sum(ahat, axis=1)
    dinv = jax.lax.rsqrt(jnp.maximum(deg, 1e-12))
    a_norm = ahat * dinv[:, None] * dinv[None, :]

    # additive GAT attention mask, pre-stacked across heads along lanes
    bias = jnp.where(ahat > 0, 0.0, MASK_NEG).astype(f32)
    bias_stk = jnp.tile(bias, (1, heads))                              # [N, Hh*N]

    # one-hot edge gathers for the link predictor
    g_src = jax.nn.one_hot(src, n, dtype=f32)                          # [E, N]
    g_dst = jax.nn.one_hot(dst, n, dtype=f32)                          # [E, N]

    # hoisted structural constants
    eye_h = jnp.eye(heads, dtype=f32)
    s_rep = jnp.kron(eye_h, jnp.ones((1, n), f32))                     # [Hh, Hh*N]
    s_sum = s_rep.T                                                    # [Hh*N, Hh]
    i_rep = jnp.tile(jnp.eye(n, dtype=f32), (1, heads))                # [N, Hh*N]
    m_blk = jnp.kron(eye_h, jnp.ones((n, output_dim), f32))            # [Hh*N, Hh*O]
    mean_blk = jnp.tile(jnp.eye(output_dim, dtype=f32), (heads, 1)) / heads  # [Hh*O, O]

    # block-diagonal attention-vector matrices (weight-derived, hoisted)
    att_src, att_dst = params["att_src"], params["att_dst"]            # [Hh, O]
    a_src_blk = (att_src[:, :, None] * eye_h[:, None, :]).reshape(heads * output_dim, heads)
    a_dst_blk = (att_dst[:, :, None] * eye_h[:, None, :]).reshape(heads * output_dim, heads)

    # split predictor first Linear into src / dst halves (avoids in-kernel concat)
    w_p1s = params["w_p1"][:output_dim]
    w_p1d = params["w_p1"][output_dim:]

    kernel = functools.partial(
        professional_gnn_kernel, n_nodes=n, n_edges=e, out_dim=output_dim)
    vmem = pl.BlockSpec(memory_space=pltpu.MemorySpace.VMEM)
    args = (
        x, a_norm, bias_stk, g_src, g_dst,
        s_rep, s_sum, i_rep, m_blk, mean_blk,
        params["w1"], params["b1"], params["w2"], params["b2"],
        params["w3"], params["b3"],
        params["w_gat"], a_src_blk, a_dst_blk, params["b_gat"],
        w_p1s, w_p1d, params["b_p1"], params["w_p2"], params["b_p2"],
    )
    emb_pad, pred_pad = pl.pallas_call(
        kernel,
        out_shape=(
            jax.ShapeDtypeStruct((n, LANE), f32),   # padded node embeddings
            jax.ShapeDtypeStruct((e, LANE), f32),   # padded edge predictions
        ),
        in_specs=[vmem] * len(args),
        out_specs=(vmem, vmem),
    )(*args)

    node_embeddings = emb_pad[:, :output_dim]       # [N, O]
    edge_predictions = pred_pad[:, 0]               # squeeze() semantics -> [E]
    return node_embeddings, edge_predictions


def init_params(key, input_dim, hidden_dim, output_dim):
    ks = jax.random.split(key, 12)
    H, O = hidden_dim, output_dim

    def lin(k, fan_in, fan_out):
        scale = (1.0 / fan_in) ** 0.5
        return jax.random.uniform(k, (fan_in, fan_out), jnp.float32, -scale, scale)

    return {
        # GCNConv layers
        "w1": lin(ks[0], input_dim, H), "b1": jnp.zeros((1, H), jnp.float32),
        "w2": lin(ks[1], H, H),         "b2": jnp.zeros((1, H), jnp.float32),
        "w3": lin(ks[2], H, O),         "b3": jnp.zeros((1, O), jnp.float32),
        # GATConv(O, O, heads=4): lin [O, Hh*O], att vectors [Hh, O], bias [1, O]
        "w_gat": lin(ks[3], O, HEADS * O),
        "att_src": jax.random.normal(ks[4], (HEADS, O), jnp.float32) * 0.1,
        "att_dst": jax.random.normal(ks[5], (HEADS, O), jnp.float32) * 0.1,
        "b_gat": jnp.zeros((1, O), jnp.float32),
        # predictor: Linear(2O -> H), Linear(H -> 1)
        "w_p1": lin(ks[6], 2 * O, H), "b_p1": jnp.zeros((1, H), jnp.float32),
        "w_p2": lin(ks[7], H, 1),     "b_p2": jnp.zeros((1, 1), jnp.float32),
    }


if __name__ == "__main__":
    INPUT_DIM = 16
    HIDDEN_DIM = 32
    OUTPUT_DIM = 16
    N_NODES = 32
    N_EDGES = 64

    key = jax.random.PRNGKey(0)
    k_x, k_src, k_dst, k_params = jax.random.split(key, 4)

    x = jax.random.normal(k_x, (N_NODES, INPUT_DIM), jnp.float32)
    src = jax.random.randint(k_src, (N_EDGES,), 0, N_NODES)
    dst = jax.random.randint(k_dst, (N_EDGES,), 0, N_NODES)
    edge_index = jnp.stack([src, dst], axis=0)

    params = init_params(k_params, INPUT_DIM, HIDDEN_DIM, OUTPUT_DIM)

    node_embeddings, edge_predictions = professional_gnn_forward(
        x, edge_index, params, hidden_dim=HIDDEN_DIM, output_dim=OUTPUT_DIM)
    jax.block_until_ready((node_embeddings, edge_predictions))

    assert node_embeddings.shape == (N_NODES, OUTPUT_DIM)
    assert edge_predictions.shape == (N_EDGES,)
    assert bool(jnp.all(jnp.isfinite(node_embeddings)))
    assert bool(jnp.all(jnp.isfinite(edge_predictions)))
    assert bool(jnp.all((edge_predictions >= 0.0) & (edge_predictions <= 1.0)))
    print("KERNEL_OK")
</pallas_src>

<mosaic_0001>
module attributes {stable_mosaic.version = 11 : i64} {
  func.func @professional_gnn_kernel(%arg0: memref<32x16xf32, #tpu.memory_space<vmem>>, %arg1: memref<32x32xf32, #tpu.memory_space<vmem>>, %arg2: memref<32x128xf32, #tpu.memory_space<vmem>>, %arg3: memref<64x32xf32, #tpu.memory_space<vmem>>, %arg4: memref<64x32xf32, #tpu.memory_space<vmem>>, %arg5: memref<4x128xf32, #tpu.memory_space<vmem>>, %arg6: memref<128x4xf32, #tpu.memory_space<vmem>>, %arg7: memref<32x128xf32, #tpu.memory_space<vmem>>, %arg8: memref<128x64xf32, #tpu.memory_space<vmem>>, %arg9: memref<64x16xf32, #tpu.memory_space<vmem>>, %arg10: memref<16x32xf32, #tpu.memory_space<vmem>>, %arg11: memref<1x32xf32, #tpu.memory_space<vmem>>, %arg12: memref<32x32xf32, #tpu.memory_space<vmem>>, %arg13: memref<1x32xf32, #tpu.memory_space<vmem>>, %arg14: memref<32x16xf32, #tpu.memory_space<vmem>>, %arg15: memref<1x16xf32, #tpu.memory_space<vmem>>, %arg16: memref<16x64xf32, #tpu.memory_space<vmem>>, %arg17: memref<64x4xf32, #tpu.memory_space<vmem>>, %arg18: memref<64x4xf32, #tpu.memory_space<vmem>>, %arg19: memref<1x16xf32, #tpu.memory_space<vmem>>, %arg20: memref<16x32xf32, #tpu.memory_space<vmem>>, %arg21: memref<16x32xf32, #tpu.memory_space<vmem>>, %arg22: memref<1x32xf32, #tpu.memory_space<vmem>>, %arg23: memref<32x1xf32, #tpu.memory_space<vmem>>, %arg24: memref<1x1xf32, #tpu.memory_space<vmem>>, %arg25: memref<32x128xf32, #tpu.memory_space<vmem>>, %arg26: memref<64x128xf32, #tpu.memory_space<vmem>>) attributes {dimension_semantics = [], scalar_prefetch = 0 : i64, scratch_operands = 0 : i64, tpu.core_type = #tpu.core_type<tc>} {
    %c0 = arith.constant 0 : index
    %c0_0 = arith.constant 0 : index
    %0 = vector.load %arg0[%c0, %c0_0] : memref<32x16xf32, #tpu.memory_space<vmem>>, vector<32x16xf32>
    %c0_1 = arith.constant 0 : index
    %c0_2 = arith.constant 0 : index
    %1 = vector.load %arg1[%c0_1, %c0_2] : memref<32x32xf32, #tpu.memory_space<vmem>>, vector<32x32xf32>
    %c0_3 = arith.constant 0 : index
    %c0_4 = arith.constant 0 : index
    %2 = vector.load %arg10[%c0_3, %c0_4] : memref<16x32xf32, #tpu.memory_space<vmem>>, vector<16x32xf32>
    %cst = arith.constant dense<0.000000e+00> : vector<32x32xf32>
    %3 = tpu.matmul %0, %2, %cst {dimension_numbers = #tpu.dot_dimension_numbers<[1], [0], [0], [1], [0, 0, 1, 1], [], []>} : vector<32x16xf32>, vector<16x32xf32>, vector<32x32xf32> -> vector<32x32xf32>
    %cst_5 = arith.constant dense<0.000000e+00> : vector<32x32xf32>
    %4 = tpu.matmul %1, %3, %cst_5 {dimension_numbers = #tpu.dot_dimension_numbers<[1], [0], [0], [1], [0, 0, 1, 1], [], []>} : vector<32x32xf32>, vector<32x32xf32>, vector<32x32xf32> -> vector<32x32xf32>
    %c0_6 = arith.constant 0 : index
    %c0_7 = arith.constant 0 : index
    %5 = vector.load %arg11[%c0_6, %c0_7] : memref<1x32xf32, #tpu.memory_space<vmem>>, vector<1x32xf32>
    %6 = vector.broadcast %5 : vector<1x32xf32> to vector<32x32xf32>
    %7 = arith.addf %4, %6 : vector<32x32xf32>
    %cst_8 = arith.constant 0.000000e+00 : f32
    %8 = vector.broadcast %cst_8 : f32 to vector<32x32xf32>
    %9 = arith.maximumf %7, %8 : vector<32x32xf32>
    %c0_9 = arith.constant 0 : index
    %c0_10 = arith.constant 0 : index
    %10 = vector.load %arg12[%c0_9, %c0_10] : memref<32x32xf32, #tpu.memory_space<vmem>>, vector<32x32xf32>
    %cst_11 = arith.constant dense<0.000000e+00> : vector<32x32xf32>
    %11 = tpu.matmul %9, %10, %cst_11 {dimension_numbers = #tpu.dot_dimension_numbers<[1], [0], [0], [1], [0, 0, 1, 1], [], []>} : vector<32x32xf32>, vector<32x32xf32>, vector<32x32xf32> -> vector<32x32xf32>
    %cst_12 = arith.constant dense<0.000000e+00> : vector<32x32xf32>
    %12 = tpu.matmul %1, %11, %cst_12 {dimension_numbers = #tpu.dot_dimension_numbers<[1], [0], [0], [1], [0, 0, 1, 1], [], []>} : vector<32x32xf32>, vector<32x32xf32>, vector<32x32xf32> -> vector<32x32xf32>
    %c0_13 = arith.constant 0 : index
    %c0_14 = arith.constant 0 : index
    %13 = vector.load %arg13[%c0_13, %c0_14] : memref<1x32xf32, #tpu.memory_space<vmem>>, vector<1x32xf32>
    %14 = vector.broadcast %13 : vector<1x32xf32> to vector<32x32xf32>
    %15 = arith.addf %12, %14 : vector<32x32xf32>
    %cst_15 = arith.constant 0.000000e+00 : f32
    %16 = vector.broadcast %cst_15 : f32 to vector<32x32xf32>
    %17 = arith.maximumf %15, %16 : vector<32x32xf32>
    %c0_16 = arith.constant 0 : index
    %c0_17 = arith.constant 0 : index
    %18 = vector.load %arg14[%c0_16, %c0_17] : memref<32x16xf32, #tpu.memory_space<vmem>>, vector<32x16xf32>
    %cst_18 = arith.constant dense<0.000000e+00> : vector<32x16xf32>
    %19 = tpu.matmul %17, %18, %cst_18 {dimension_numbers = #tpu.dot_dimension_numbers<[1], [0], [0], [1], [0, 0, 1, 1], [], []>} : vector<32x32xf32>, vector<32x16xf32>, vector<32x16xf32> -> vector<32x16xf32>
    %cst_19 = arith.constant dense<0.000000e+00> : vector<32x16xf32>
    %20 = tpu.matmul %1, %19, %cst_19 {dimension_numbers = #tpu.dot_dimension_numbers<[1], [0], [0], [1], [0, 0, 1, 1], [], []>} : vector<32x32xf32>, vector<32x16xf32>, vector<32x16xf32> -> vector<32x16xf32>
    %c0_20 = arith.constant 0 : index
    %c0_21 = arith.constant 0 : index
    %21 = vector.load %arg15[%c0_20, %c0_21] : memref<1x16xf32, #tpu.memory_space<vmem>>, vector<1x16xf32>
    %22 = vector.broadcast %21 : vector<1x16xf32> to vector<32x16xf32>
    %23 = arith.addf %20, %22 : vector<32x16xf32>
    %c0_22 = arith.constant 0 : index
    %c0_23 = arith.constant 0 : index
    %24 = vector.load %arg5[%c0_22, %c0_23] : memref<4x128xf32, #tpu.memory_space<vmem>>, vector<4x128xf32>
    %c0_24 = arith.constant 0 : index
    %c0_25 = arith.constant 0 : index
    %25 = vector.load %arg16[%c0_24, %c0_25] : memref<16x64xf32, #tpu.memory_space<vmem>>, vector<16x64xf32>
    %cst_26 = arith.constant dense<0.000000e+00> : vector<32x64xf32>
    %26 = tpu.matmul %23, %25, %cst_26 {dimension_numbers = #tpu.dot_dimension_numbers<[1], [0], [0], [1], [0, 0, 1, 1], [], []>} : vector<32x16xf32>, vector<16x64xf32>, vector<32x64xf32> -> vector<32x64xf32>
    %c0_27 = arith.constant 0 : index
    %c0_28 = arith.constant 0 : index
    %27 = vector.load %arg18[%c0_27, %c0_28] : memref<64x4xf32, #tpu.memory_space<vmem>>, vector<64x4xf32>
    %cst_29 = arith.constant dense<0.000000e+00> : vector<32x4xf32>
    %28 = tpu.matmul %26, %27, %cst_29 {dimension_numbers = #tpu.dot_dimension_numbers<[1], [0], [0], [1], [0, 0, 1, 1], [], []>} : vector<32x64xf32>, vector<64x4xf32>, vector<32x4xf32> -> vector<32x4xf32>
    %c0_30 = arith.constant 0 : index
    %c0_31 = arith.constant 0 : index
    %29 = vector.load %arg17[%c0_30, %c0_31] : memref<64x4xf32, #tpu.memory_space<vmem>>, vector<64x4xf32>
    %cst_32 = arith.constant dense<0.000000e+00> : vector<32x4xf32>
    %30 = tpu.matmul %26, %29, %cst_32 {dimension_numbers = #tpu.dot_dimension_numbers<[1], [0], [0], [1], [0, 0, 1, 1], [], []>} : vector<32x64xf32>, vector<64x4xf32>, vector<32x4xf32> -> vector<32x4xf32>
    %cst_33 = arith.constant dense<0.000000e+00> : vector<32x128xf32>
    %31 = tpu.matmul %28, %24, %cst_33 {dimension_numbers = #tpu.dot_dimension_numbers<[1], [0], [0], [1], [0, 0, 1, 1], [], []>} : vector<32x4xf32>, vector<4x128xf32>, vector<32x128xf32> -> vector<32x128xf32>
    %cst_34 = arith.constant dense<0.000000e+00> : vector<32x128xf32>
    %32 = tpu.matmul %30, %24, %cst_34 {dimension_numbers = #tpu.dot_dimension_numbers<[1], [0], [0], [1], [0, 0, 1, 1], [], []>} : vector<32x4xf32>, vector<4x128xf32>, vector<32x128xf32> -> vector<32x128xf32>
    %c0_35 = arith.constant 0 : index
    %c0_36 = arith.constant 0 : index
    %33 = vector.load %arg7[%c0_35, %c0_36] : memref<32x128xf32, #tpu.memory_space<vmem>>, vector<32x128xf32>
    %34 = arith.mulf %32, %33 : vector<32x128xf32>
    %cst_37 = arith.constant dense<0.000000e+00> : vector<128xf32>
    %35 = vector.multi_reduction <add>, %34, %cst_37 [0] : vector<32x128xf32> to vector<128xf32>
    %36 = vector.shape_cast %35 : vector<128xf32> to vector<1x128xf32>
    %37 = vector.broadcast %36 : vector<1x128xf32> to vector<32x128xf32>
    %38 = arith.addf %31, %37 : vector<32x128xf32>
    %cst_38 = arith.constant 0.000000e+00 : f32
    %39 = vector.broadcast %cst_38 : f32 to vector<32x128xf32>
    %40 = arith.cmpf ogt, %38, %39 : vector<32x128xf32>
    %cst_39 = arith.constant 2.000000e-01 : f32
    %41 = vector.broadcast %cst_39 : f32 to vector<32x128xf32>
    %42 = arith.mulf %41, %38 : vector<32x128xf32>
    %43 = arith.select %40, %38, %42 : vector<32x128xi1>, vector<32x128xf32>
    %c0_40 = arith.constant 0 : index
    %c0_41 = arith.constant 0 : index
    %44 = vector.load %arg2[%c0_40, %c0_41] : memref<32x128xf32, #tpu.memory_space<vmem>>, vector<32x128xf32>
    %45 = arith.addf %43, %44 : vector<32x128xf32>
    %46 = vector.extract_strided_slice %45 {offsets = [0, 0], sizes = [32, 32], strides = [1, 1]} : vector<32x128xf32> to vector<32x32xf32>
    %cst_42 = arith.constant dense<0xFF800000> : vector<32xf32>
    %47 = vector.multi_reduction <maximumf>, %46, %cst_42 [1] : vector<32x32xf32> to vector<32xf32>
    %48 = vector.shape_cast %47 : vector<32xf32> to vector<32x1xf32>
    %49 = vector.extract_strided_slice %45 {offsets = [0, 32], sizes = [32, 32], strides = [1, 1]} : vector<32x128xf32> to vector<32x32xf32>
    %cst_43 = arith.constant dense<0xFF800000> : vector<32xf32>
    %50 = vector.multi_reduction <maximumf>, %49, %cst_43 [1] : vector<32x32xf32> to vector<32xf32>
    %51 = vector.shape_cast %50 : vector<32xf32> to vector<32x1xf32>
    %52 = vector.extract_strided_slice %45 {offsets = [0, 64], sizes = [32, 32], strides = [1, 1]} : vector<32x128xf32> to vector<32x32xf32>
    %cst_44 = arith.constant dense<0xFF800000> : vector<32xf32>
    %53 = vector.multi_reduction <maximumf>, %52, %cst_44 [1] : vector<32x32xf32> to vector<32xf32>
    %54 = vector.shape_cast %53 : vector<32xf32> to vector<32x1xf32>
    %55 = vector.extract_strided_slice %45 {offsets = [0, 96], sizes = [32, 32], strides = [1, 1]} : vector<32x128xf32> to vector<32x32xf32>
    %cst_45 = arith.constant dense<0xFF800000> : vector<32xf32>
    %56 = vector.multi_reduction <maximumf>, %55, %cst_45 [1] : vector<32x32xf32> to vector<32xf32>
    %57 = vector.shape_cast %56 : vector<32xf32> to vector<32x1xf32>
    %58 = tpu.concatenate %48, %51, %54, %57 in 1 : vector<32x1xf32>, vector<32x1xf32>, vector<32x1xf32>, vector<32x1xf32> -> vector<32x4xf32>
    %cst_46 = arith.constant dense<0.000000e+00> : vector<32x128xf32>
    %59 = tpu.matmul %58, %24, %cst_46 {dimension_numbers = #tpu.dot_dimension_numbers<[1], [0], [0], [1], [0, 0, 1, 1], [], []>} : vector<32x4xf32>, vector<4x128xf32>, vector<32x128xf32> -> vector<32x128xf32>
    %60 = arith.subf %45, %59 : vector<32x128xf32>
    %61 = math.exp %60 : vector<32x128xf32>
    %c0_47 = arith.constant 0 : index
    %c0_48 = arith.constant 0 : index
    %62 = vector.load %arg6[%c0_47, %c0_48] : memref<128x4xf32, #tpu.memory_space<vmem>>, vector<128x4xf32>
    %cst_49 = arith.constant dense<0.000000e+00> : vector<32x4xf32>
    %63 = tpu.matmul %61, %62, %cst_49 {dimension_numbers = #tpu.dot_dimension_numbers<[1], [0], [0], [1], [0, 0, 1, 1], [], []>} : vector<32x128xf32>, vector<128x4xf32>, vector<32x4xf32> -> vector<32x4xf32>
    %64 = tpu.reciprocal %63 {approx = true} : vector<32x4xf32> -> vector<32x4xf32>
    %cst_50 = arith.constant dense<0.000000e+00> : vector<32x128xf32>
    %65 = tpu.matmul %64, %24, %cst_50 {dimension_numbers = #tpu.dot_dimension_numbers<[1], [0], [0], [1], [0, 0, 1, 1], [], []>} : vector<32x4xf32>, vector<4x128xf32>, vector<32x128xf32> -> vector<32x128xf32>
    %66 = arith.mulf %61, %65 : vector<32x128xf32>
    %67 = tpu.concatenate %26, %26, %26, %26 in 0 : vector<32x64xf32>, vector<32x64xf32>, vector<32x64xf32>, vector<32x64xf32> -> vector<128x64xf32>
    %c0_51 = arith.constant 0 : index
    %c0_52 = arith.constant 0 : index
    %68 = vector.load %arg8[%c0_51, %c0_52] : memref<128x64xf32, #tpu.memory_space<vmem>>, vector<128x64xf32>
    %69 = arith.mulf %67, %68 : vector<128x64xf32>
    %cst_53 = arith.constant dense<0.000000e+00> : vector<32x64xf32>
    %70 = tpu.matmul %66, %69, %cst_53 {dimension_numbers = #tpu.dot_dimension_numbers<[1], [0], [0], [1], [0, 0, 1, 1], [], []>} : vector<32x128xf32>, vector<128x64xf32>, vector<32x64xf32> -> vector<32x64xf32>
    %c0_54 = arith.constant 0 : index
    %c0_55 = arith.constant 0 : index
    %71 = vector.load %arg9[%c0_54, %c0_55] : memref<64x16xf32, #tpu.memory_space<vmem>>, vector<64x16xf32>
    %cst_56 = arith.constant dense<0.000000e+00> : vector<32x16xf32>
    %72 = tpu.matmul %70, %71, %cst_56 {dimension_numbers = #tpu.dot_dimension_numbers<[1], [0], [0], [1], [0, 0, 1, 1], [], []>} : vector<32x64xf32>, vector<64x16xf32>, vector<32x16xf32> -> vector<32x16xf32>
    %c0_57 = arith.constant 0 : index
    %c0_58 = arith.constant 0 : index
    %73 = vector.load %arg19[%c0_57, %c0_58] : memref<1x16xf32, #tpu.memory_space<vmem>>, vector<1x16xf32>
    %74 = vector.broadcast %73 : vector<1x16xf32> to vector<32x16xf32>
    %75 = arith.addf %72, %74 : vector<32x16xf32>
    %c0_59 = arith.constant 0 : index
    %c0_60 = arith.constant 0 : index
    %76 = vector.load %arg20[%c0_59, %c0_60] : memref<16x32xf32, #tpu.memory_space<vmem>>, vector<16x32xf32>
    %cst_61 = arith.constant dense<0.000000e+00> : vector<32x32xf32>
    %77 = tpu.matmul %75, %76, %cst_61 {dimension_numbers = #tpu.dot_dimension_numbers<[1], [0], [0], [1], [0, 0, 1, 1], [], []>} : vector<32x16xf32>, vector<16x32xf32>, vector<32x32xf32> -> vector<32x32xf32>
    %c0_62 = arith.constant 0 : index
    %c0_63 = arith.constant 0 : index
    %78 = vector.load %arg21[%c0_62, %c0_63] : memref<16x32xf32, #tpu.memory_space<vmem>>, vector<16x32xf32>
    %cst_64 = arith.constant dense<0.000000e+00> : vector<32x32xf32>
    %79 = tpu.matmul %75, %78, %cst_64 {dimension_numbers = #tpu.dot_dimension_numbers<[1], [0], [0], [1], [0, 0, 1, 1], [], []>} : vector<32x16xf32>, vector<16x32xf32>, vector<32x32xf32> -> vector<32x32xf32>
    %c0_65 = arith.constant 0 : index
    %c0_66 = arith.constant 0 : index
    %80 = vector.load %arg3[%c0_65, %c0_66] : memref<64x32xf32, #tpu.memory_space<vmem>>, vector<64x32xf32>
    %cst_67 = arith.constant dense<0.000000e+00> : vector<64x32xf32>
    %81 = tpu.matmul %80, %77, %cst_67 {dimension_numbers = #tpu.dot_dimension_numbers<[1], [0], [0], [1], [0, 0, 1, 1], [], []>} : vector<64x32xf32>, vector<32x32xf32>, vector<64x32xf32> -> vector<64x32xf32>
    %c0_68 = arith.constant 0 : index
    %c0_69 = arith.constant 0 : index
    %82 = vector.load %arg4[%c0_68, %c0_69] : memref<64x32xf32, #tpu.memory_space<vmem>>, vector<64x32xf32>
    %cst_70 = arith.constant dense<0.000000e+00> : vector<64x32xf32>
    %83 = tpu.matmul %82, %79, %cst_70 {dimension_numbers = #tpu.dot_dimension_numbers<[1], [0], [0], [1], [0, 0, 1, 1], [], []>} : vector<64x32xf32>, vector<32x32xf32>, vector<64x32xf32> -> vector<64x32xf32>
    %84 = arith.addf %81, %83 : vector<64x32xf32>
    %c0_71 = arith.constant 0 : index
    %c0_72 = arith.constant 0 : index
    %85 = vector.load %arg22[%c0_71, %c0_72] : memref<1x32xf32, #tpu.memory_space<vmem>>, vector<1x32xf32>
    %86 = vector.broadcast %85 : vector<1x32xf32> to vector<64x32xf32>
    %87 = arith.addf %84, %86 : vector<64x32xf32>
    %cst_73 = arith.constant 0.000000e+00 : f32
    %88 = vector.broadcast %cst_73 : f32 to vector<64x32xf32>
    %89 = arith.maximumf %87, %88 : vector<64x32xf32>
    %c0_74 = arith.constant 0 : index
    %c0_75 = arith.constant 0 : index
    %90 = vector.load %arg23[%c0_74, %c0_75] : memref<32x1xf32, #tpu.memory_space<vmem>>, vector<32x1xf32>
    %cst_76 = arith.constant dense<0.000000e+00> : vector<64x1xf32>
    %91 = tpu.matmul %89, %90, %cst_76 {dimension_numbers = #tpu.dot_dimension_numbers<[1], [0], [0], [1], [0, 0, 1, 1], [], []>} : vector<64x32xf32>, vector<32x1xf32>, vector<64x1xf32> -> vector<64x1xf32>
    %c0_77 = arith.constant 0 : index
    %c0_78 = arith.constant 0 : index
    %92 = vector.load %arg24[%c0_77, %c0_78] : memref<1x1xf32, #tpu.memory_space<vmem>>, vector<1x1xf32>
    %93 = vector.broadcast %92 : vector<1x1xf32> to vector<64x1xf32>
    %94 = arith.addf %91, %93 : vector<64x1xf32>
    %95 = arith.negf %94 : vector<64x1xf32>
    %96 = math.exp %95 : vector<64x1xf32>
    %cst_79 = arith.constant 1.000000e+00 : f32
    %97 = vector.broadcast %cst_79 : f32 to vector<64x1xf32>
    %98 = arith.addf %97, %96 : vector<64x1xf32>
    %99 = arith.divf %97, %98 : vector<64x1xf32>
    %cst_80 = arith.constant 0.000000e+00 : f32
    %100 = vector.broadcast %cst_80 : f32 to vector<32x112xf32>
    %101 = tpu.concatenate %75, %100 in 1 : vector<32x16xf32>, vector<32x112xf32> -> vector<32x128xf32>
    %c0_81 = arith.constant 0 : index
    %c0_82 = arith.constant 0 : index
    %102 = vector.load %arg25[%c0_81, %c0_82] : memref<32x128xf32, #tpu.memory_space<vmem>>, vector<32x128xf32>
    tpu.vector_store %arg25[%c0_81, %c0_82], %101 {strides = array<i32>} : memref<32x128xf32, #tpu.memory_space<vmem>>, vector<32x128xf32>,
    %cst_83 = arith.constant 0.000000e+00 : f32
    %103 = vector.broadcast %cst_83 : f32 to vector<64x127xf32>
    %104 = tpu.concatenate %99, %103 in 1 : vector<64x1xf32>, vector<64x127xf32> -> vector<64x128xf32>
    %c0_84 = arith.constant 0 : index
    %c0_85 = arith.constant 0 : index
    %105 = vector.load %arg26[%c0_84, %c0_85] : memref<64x128xf32, #tpu.memory_space<vmem>>, vector<64x128xf32>
    tpu.vector_store %arg26[%c0_84, %c0_85], %104 {strides = array<i32>} : memref<64x128xf32, #tpu.memory_space<vmem>>, vector<64x128xf32>,
    return
  }
}

</mosaic_0001>

<bundles_post_ra>
// kernel: tpu_custom_call.1
= control target key start
LH: loop header
LB: loop body
LE: loop exit
PB: predicated region body
PF: predicated region fallthrough
CT: control target
= control target key end

     0   :  { %s4267_s0 = inlined_call_operand.vmem [shape: f32[32,16], index: 0, kind: input, shape index: {}]   ;;  %s4268_s1 = inlined_call_operand.vmem [shape: f32[32,32], index: 1, kind: input, shape index: {}]   ;;  %s4269_s2 = inlined_call_operand.vmem [shape: f32[32,128], index: 2, kind: input, shape index: {}]   ;;  %s4270_s3 = inlined_call_operand.vmem [shape: f32[64,32], index: 3, kind: input, shape index: {}]   ;;  %s4271_s4 = inlined_call_operand.vmem [shape: f32[64,32], index: 4, kind: input, shape index: {}]   ;;  %s4272_s5 = inlined_call_operand.vmem [shape: f32[4,128], index: 5, kind: input, shape index: {}]   ;;  %s4273_s6 = inlined_call_operand.vmem [shape: f32[128,4], index: 6, kind: input, shape index: {}]   ;;  %s4274_s7 = inlined_call_operand.vmem [shape: f32[32,128], index: 7, kind: input, shape index: {}]   ;;  %s4275_s8 = inlined_call_operand.vmem [shape: f32[128,64], index: 8, kind: input, shape index: {}]   ;;  %s4276_s9 = inlined_call_operand.vmem [shape: f32[64,16], index: 9, kind: input, shape index: {}]   ;;  %s4277_s10 = inlined_call_operand.vmem [shape: f32[16,32], index: 10, kind: input, shape index: {}]   ;;  %s4278_s11 = inlined_call_operand.vmem [shape: f32[1,32], index: 11, kind: input, shape index: {}]   ;;  %s4279_s12 = inlined_call_operand.vmem [shape: f32[32,32], index: 12, kind: input, shape index: {}]   ;;  %s4280_s13 = inlined_call_operand.vmem [shape: f32[1,32], index: 13, kind: input, shape index: {}]   ;;  %s4281_s14 = inlined_call_operand.vmem [shape: f32[32,16], index: 14, kind: input, shape index: {}]   ;;  %s4282_s15 = inlined_call_operand.vmem [shape: f32[1,16], index: 15, kind: input, shape index: {}]   ;;  %s4283_s16 = inlined_call_operand.vmem [shape: f32[16,64], index: 16, kind: input, shape index: {}]   ;;  %s4284_s17 = inlined_call_operand.vmem [shape: f32[64,4], index: 17, kind: input, shape index: {}]   ;;  %s4285_s18 = inlined_call_operand.vmem [shape: f32[64,4], index: 18, kind: input, shape index: {}]   ;;  %s4286_s19 = inlined_call_operand.vmem [shape: f32[1,16], index: 19, kind: input, shape index: {}]   ;;  %s4287_s20 = inlined_call_operand.vmem [shape: f32[16,32], index: 20, kind: input, shape index: {}]   ;;  %s4288_s21 = inlined_call_operand.vmem [shape: f32[16,32], index: 21, kind: input, shape index: {}]   ;;  %s4289_s22 = inlined_call_operand.vmem [shape: f32[1,32], index: 22, kind: input, shape index: {}]   ;;  %s4290_s23 = inlined_call_operand.vmem [shape: f32[32,1], index: 23, kind: input, shape index: {}]   ;;  %s4291_s24 = inlined_call_operand.<no memory space> [shape: f32[1,1], index: 24, kind: input, shape index: {}]   ;;  %s4292_s25 = inlined_call_operand.hbm [shape: f32[32,128], index: 25, kind: output, shape index: {0}]   ;;  %s4293_s26 = inlined_call_operand.hbm [shape: f32[64,128], index: 26, kind: output, shape index: {1}]  }
   0x1   :  { %4304 = sst [smem:[#allocation9_spill]] %s4267_s0  ;;  %v32_v0 = vstv %s4291_s24 }
   0x2   :  { %4305 = sst [smem:[#allocation10_spill]] %s4268_s1  ;;  %33 = vst [vmem:[#allocation2] sm:$0x1] %v32_v0 }
   0x3   :  { %4306 = sst [smem:[#allocation11_spill]] %s4269_s2 }
   0x4   :  { %4307 = sst [smem:[#allocation12_spill]] %s4270_s3 }
   0x5   :  { %4308 = sst [smem:[#allocation13_spill]] %s4271_s4 }
   0x6   :  { %4309 = sst [smem:[#allocation14_spill]] %s4272_s5 }
   0x7   :  { %4310 = sst [smem:[#allocation15_spill]] %s4273_s6 }
   0x8   :  { %4311 = sst [smem:[#allocation16_spill]] %s4274_s7 }
   0x9   :  { %4312 = sst [smem:[#allocation17_spill]] %s4275_s8 }
   0xa   :  { %4313 = sst [smem:[#allocation18_spill]] %s4276_s9 }
   0xb   :  { %4314 = sst [smem:[#allocation19_spill]] %s4277_s10 }
   0xc   :  { %34 = vsyncpa [#allocation4], 0  ;;  %s4315_s8 = sld [smem:[#allocation19_spill]]  ;;  %s4316_s30 = sld [smem:[#allocation9_spill]]  ;;  %vm96_vm0 = vcmask 130048  }
  0x12   :  { %v94_v1 = vld [vmem:[%s4315_s8] sm:$0xff]  ;;  %v95_v2 = vld [vmem:[%s4315_s8 + $0x8] sm:$0xff] }
  0x13   :  { %v86_v3 = vld [vmem:[%s4316_s30] sm:$0xff]  ;;  %v3211_v4 = vpack.c.bf16 %v95_v2, %v94_v1 }
  0x14   :  { %2871 = vmatprep.mubr.msk.f32.mxu0 %vm96_vm0, %v86_v3 }
  0x15   :  { %35 = vsyncpa [#allocation6], 0  ;;  %3212 = vmatprep.subr.bf16.mxu0 %v3211_v4  ;;  %v87_v5 = vld [vmem:[%s4316_s30 + $0x8] sm:$0xff]  ;;  %v88_v6 = vld [vmem:[%s4316_s30 + $0x10] sm:$0xff]  ;;  %s4317_s7 = sld [smem:[#allocation10_spill]]  ;;  %vm201_vm1 = vcmask 261120  }
  0x16   :  { %3214 = vmatpush3.bf16.msra.mxu0 %v3211_v4  ;;  %v89_v7 = vld [vmem:[%s4316_s30 + $0x18] sm:$0xff]  ;;  %v303_v12 = vld [vmem:[%s4279_s12] sm:$0xff]  ;;  %v304_v13 = vld [vmem:[%s4279_s12 + $0x8] sm:$0xff]  ;;  %s4318_s0 = sld [smem:[#allocation14_spill]]  ;;  %vm1005_vm2 = vcmask 1043456   ;;  %s4319_s30 = sld [smem:[#allocation17_spill]] }
  0x17   :  { %v3223_v17 = vpack.c.bf16 %v304_v13, %v303_v12  ;;  %v305_v21 = vld [vmem:[%s4279_s12 + $0x10] sm:$0xff]  ;;  %v306_v22 = vld [vmem:[%s4279_s12 + $0x18] sm:$0xff]  ;;  %v2569_v24 = vld [vmem:[%s4278_s11] ss:$0 sm:$0xff]  ;;  %vm801_vm3 = vcmask 523264   ;;  %vm992_vm4 = vcmask 31744  }
  0x18   :  { %v3227_v23 = vpack.c.bf16 %v306_v22, %v305_v21  ;;  %v500_v37 = vld [vmem:[%s4281_s14] sm:$0xff]  ;;  %v501_v38 = vld [vmem:[%s4281_s14 + $0x8] sm:$0xff]  ;;  %v502_v46 = vld [vmem:[%s4281_s14 + $0x10] sm:$0xff]  ;;  %s4320_s1 = sld [smem:[#allocation16_spill]]  ;;  %s4321_s8 = sld [smem:[#allocation11_spill]]  ;;  %vm1240_vm7 = vcmask 523520  }
  0x19   :  { %2872 = vmatmul.mubr.msk.f32.vlgmr.msra.gmra.mrb[0].mxu0 %vm96_vm0, %v87_v5  ;;  %v3239_v39 = vpack.c.bf16 %v501_v38, %v500_v37  ;;  %v503_v47 = vld [vmem:[%s4281_s14 + $0x18] sm:$0xff]  ;;  %v2578_v49 = vld [vmem:[%s4280_s13] ss:$0 sm:$0xff]  ;;  %v695_v63 = vld [vmem:[%s4283_s16 + $0x8] sm:$0xff]  ;;  %vm1253_vm8 = vcmask 785920   ;;  %vm1266_vm10 = vcmask 1048320  }
  0x1a   :  { %2874 = vmatprep.mubr.msk.f32.mxu0 %vm96_vm0, %v88_v6  ;;  %v3243_v48 = vpack.c.bf16 %v503_v47, %v502_v46  ;;  %v694_v62 = vld [vmem:[%s4283_s16] sm:$0xff]  ;;  %v795_v12 = vld [vmem:[%s4285_s18 + $0x10] sm:$0xff]  ;;  %v796_v13 = vld [vmem:[%s4285_s18 + $0x18] sm:$0xff]  ;;  %s4322_s2 = sld [smem:[#allocation15_spill]]  ;;  %vm1279_vm12 = vcmask 7168   ;;  %vm1284_vm13 = vcmask 15360  }
  0x1b   :  { %v3678_v8 = vld [vmem:[%s4317_s7] sm:$0xff]  ;;  %v3693_v18 = vld [vmem:[%s4317_s7 + $0x8] sm:$0xff]  ;;  %v3698_v19 = vld [vmem:[%s4317_s7 + $0x10] sm:$0xff]  ;;  %v3255_v0 = vpack.c.bf16 %v695_v63, %v694_v62  ;;  %vm1289_vm14 = vcmask 23552   ;;  %s4323_s3 = sld [smem:[#allocation18_spill]]  ;;  %s4325_s27 = sld [smem:[#allocation12_spill]] }
  0x1c   :  { %2913 = vmatprep.mubr.msk.f32.mxu1 %vm201_vm1, %v3678_v8  ;;  %v3707_v20 = vld [vmem:[%s4317_s7 + $0x18] sm:$0xff]  ;;  %v2587_v22 = vld [vmem:[%s4282_s15] ss:$0 sm:$0xff]  ;;  %v905_v37 = vld [vmem:[%s4284_s17 + $0x30] sm:$0xff] }
  0x1d   :  { %2875 = vmatmul.mubr.msk.f32.gmra.mrb[2].mxu0 %vm96_vm0, %v89_v7  ;;  %v793_v7 = vld [vmem:[%s4285_s18] sm:$0xff]  ;;  %v906_v38 = vld [vmem:[%s4284_s17 + $0x38] sm:$0xff]  ;;  %v1615_v62 = vld [vmem:[%s4319_s30 + $0x30] sm:$0xff] }
  0x1e   :  { %2885 = vmatprep.mubr.msk.f32.mxu0 %vm201_vm1, %v3678_v8  ;;  %v1613_v46 = vld [vmem:[%s4319_s30 + $0x20] sm:$0xff]  ;;  %v1619_v63 = vld [vmem:[%s4319_s30 + $0x50] sm:$0xff] }
  0x1f   :  { %v1617_v47 = vld [vmem:[%s4319_s30 + $0x40] sm:$0xff] }
  0xec   :  { %v2873_v9 = vpop.f32.mrb[0].mxu0 }
  0xed   :  { %v175_v10 = vpop.f32.mrb[1].mxu0 }
  0xee   :  { %v3215_v11 = vpack.c.bf16 %v2873_v9, %v175_v10  ;;  %v899_v9 = vld [vmem:[%s4284_s17] sm:$0xff] }
  0xf0   :  { %v2876_v14 = vpop.f32.mrb[2].mxu0  ;;  %3216 = vmatprep.subr.bf16.mxu0 %v3215_v11 }
  0xf1   :  { %v185_v15 = vpop.f32.mrb[3].mxu0  ;;  %3218 = vmatpush3.bf16.msra.mxu0 %v3215_v11  ;;  %v900_v11 = vld [vmem:[%s4284_s17 + $0x8] sm:$0xff] }
  0xf2   :  { %v3219_v16 = vpack.c.bf16 %v2876_v14, %v185_v15  ;;  %v3275_v14 = vpack.c.bf16 %v900_v11, %v899_v9  ;;  %v3263_v15 = vpack.c.bf16 %v796_v13, %v795_v12 }
  0xf4   :  { %3220 = vmatprep.subr.bf16.mxu0 %v3219_v16 }
  0xf5   :  { %3222 = vmatpush3.bf16.msra.mxu0 %v3219_v16  ;;  %v797_v16 = vld [vmem:[%s4285_s18 + $0x20] sm:$0xff] }
  0xf6   :  { %3224 = vmatprep.subr.bf16.mxu0 %v3223_v17 }
  0xf8   :  { %2886 = vmatmul.mubr.msk.f32.vlgmr.msra.gmra.mrb[4].mxu0 %vm201_vm1, %v3693_v18 }
  0xf9   :  { %2888 = vmatprep.mubr.msk.f32.mxu0 %vm201_vm1, %v3698_v19  ;;  %3226 = vmatpush3.bf16.msra.mxu0 %v3223_v17  ;;  %v798_v17 = vld [vmem:[%s4285_s18 + $0x28] sm:$0xff] }
  0xfa   :  { %3228 = vmatprep.subr.bf16.mxu0 %v3227_v23 }
  0xfc   :  { %2889 = vmatmul.mubr.msk.f32.gmra.mrb[6].mxu0 %vm201_vm1, %v3707_v20 }
  0xfd   :  { %3230 = vmatpush3.bf16.msra.mxu0 %v3227_v23 }
  0xfe   :  { %3240 = vmatprep.subr.bf16.mxu0 %v3239_v39 }
 0x1cb   :  { %v2887_v25 = vpop.f32.mrb[4].mxu0 }
 0x1cc   :  { %v286_v26 = vadd.f32 %v2887_v25, %v2569_v24  ;;  %v280_v27 = vpop.f32.mrb[5].mxu0  ;;  %v902_v25 = vld [vmem:[%s4284_s17 + $0x18] sm:$0xff] }
 0x1cd   :  { %v281_v28 = vadd.f32 %v2569_v24, %v280_v27 }
 0x1ce   :  { %v300_v31 = vmax.f32 %v286_v26, 0.0 }
 0x1cf   :  { %v299_v29 = vmax.f32 %v281_v28, 0.0  ;;  %v2890_v30 = vpop.f32.mrb[6].mxu0 }
 0x1d0   :  { %v296_v32 = vadd.f32 %v2890_v30, %v2569_v24  ;;  %v290_v33 = vpop.f32.mrb[7].mxu0 }
 0x1d1   :  { %v291_v34 = vadd.f32 %v2569_v24, %v290_v33  ;;  %2899 = vmatprep.mubr.msk.f32.mxu0 %vm201_vm1, %v299_v29  ;;  %v901_v24 = vld [vmem:[%s4284_s17 + $0x10] sm:$0xff] }
 0x1d2   :  { %2900 = vmatmul.mubr.msk.f32.vlgmr.msra.gmra.mrb[8].mxu0 %vm201_vm1, %v300_v31  ;;  %v302_v36 = vmax.f32 %v296_v32, 0.0  ;;  %v3279_v29 = vpack.c.bf16 %v902_v25, %v901_v24  ;;  %v903_v31 = vld [vmem:[%s4284_s17 + $0x20] sm:$0xff]  ;;  %v904_v32 = vld [vmem:[%s4284_s17 + $0x28] sm:$0xff] }
 0x1d3   :  { %v301_v35 = vmax.f32 %v291_v34, 0.0  ;;  %3242 = vmatpush3.bf16.msra.mxu0 %v3239_v39  ;;  %v3287_v39 = vpack.c.bf16 %v906_v38, %v905_v37  ;;  %v1096_v37 = vld [vmem:[%s4320_s1 + $0x10] sm:$0xff] }
 0x1d4   :  { %3244 = vmatprep.subr.bf16.mxu0 %v3243_v48 }
 0x1d5   :  { %2902 = vmatprep.mubr.msk.f32.mxu0 %vm201_vm1, %v301_v35 }
 0x1d6   :  { %2903 = vmatmul.mubr.msk.f32.gmra.mrb[10].mxu0 %vm201_vm1, %v302_v36  ;;  %v3283_v36 = vpack.c.bf16 %v904_v32, %v903_v31 }
 0x1d7   :  { %3246 = vmatpush3.bf16.msra.mxu0 %v3243_v48 }
 0x1d8   :  { %3256 = vmatprep.subr.bf16.mxu0 %v3255_v0 }
 0x2a5   :  { %v2901_v40 = vpop.f32.mrb[8].mxu0 }
 0x2a6   :  { %v385_v41 = vpop.f32.mrb[9].mxu0 }
 0x2a7   :  { %v3231_v42 = vpack.c.bf16 %v2901_v40, %v385_v41  ;;  %v3821_v40 = vld [vmem:[%s4318_s0] sm:$0xf]  ;;  %v1610_v41 = vld [vmem:[%s4319_s30 + $0x8] sm:$0xff] }
 0x2a9   :  { %v2904_v43 = vpop.f32.mrb[10].mxu0  ;;  %3232 = vmatprep.subr.bf16.mxu1 %v3231_v42 }
 0x2aa   :  { %v395_v44 = vpop.f32.mrb[11].mxu0  ;;  %3234 = vmatpush3.bf16.msra.mxu1 %v3231_v42  ;;  %v1614_v42 = vld [vmem:[%s4319_s30 + $0x28] sm:$0xff] }
 0x2ab   :  { %v3235_v45 = vpack.c.bf16 %v2904_v43, %v395_v44  ;;  %v1618_v43 = vld [vmem:[%s4319_s30 + $0x48] sm:$0xff] }
 0x2ac   :  { %v1622_v44 = vld [vmem:[%s4319_s30 + $0x68] sm:$0xff] }
 0x2ad   :  { %3236 = vmatprep.subr.bf16.mxu1 %v3235_v45 }
 0x2ae   :  { %3238 = vmatpush3.bf16.msra.mxu1 %v3235_v45  ;;  %v1609_v45 = vld [vmem:[%s4319_s30] sm:$0xff] }
 0x2b1   :  { %2914 = vmatmul.mubr.msk.f32.vlgmr.msra.gmra.mrb[0].mxu1 %vm201_vm1, %v3693_v18 }
 0x2b2   :  { %2916 = vmatprep.mubr.msk.f32.mxu1 %vm201_vm1, %v3698_v19 }
 0x2b5   :  { %2917 = vmatmul.mubr.msk.f32.gmra.mrb[2].mxu1 %vm201_vm1, %v3707_v20 }
 0x2b6   :  { %2941 = vmatprep.mubr.msk.f32.mxu1 %vm201_vm1, %v3678_v8  ;;  %v794_v8 = vld [vmem:[%s4285_s18 + $0x8] sm:$0xff] }
 0x2b7   :  { %v3259_v10 = vpack.c.bf16 %v794_v8, %v793_v7 }
 0x384   :  { %v2915_v50 = vpop.f32.mrb[0].mxu1 }
 0x385   :  { %v483_v51 = vadd.f32 %v2915_v50, %v2578_v49  ;;  %v477_v52 = vpop.f32.mrb[1].mxu1 }
 0x386   :  { %v478_v53 = vadd.f32 %v2578_v49, %v477_v52 }
 0x387   :  { %v497_v56 = vmax.f32 %v483_v51, 0.0 }
 0x388   :  { %v496_v54 = vmax.f32 %v478_v53, 0.0  ;;  %v2918_v55 = vpop.f32.mrb[2].mxu1 }
 0x389   :  { %v493_v57 = vadd.f32 %v2918_v55, %v2578_v49  ;;  %v487_v58 = vpop.f32.mrb[3].mxu1 }
 0x38a   :  { %v488_v59 = vadd.f32 %v2578_v49, %v487_v58  ;;  %2927 = vmatprep.mubr.msk.f32.mxu0 %vm201_vm1, %v496_v54  ;;  %v1621_v49 = vld [vmem:[%s4319_s30 + $0x60] sm:$0xff]  ;;  %v1616_v58 = vld [vmem:[%s4319_s30 + $0x38] sm:$0xff] }
 0x38b   :  { %2928 = vmatmul.mubr.msk.f32.vlgmr.msra.gmra.mrb[12].mxu0 %vm201_vm1, %v497_v56  ;;  %v499_v61 = vmax.f32 %v493_v57, 0.0  ;;  %v1612_v56 = vld [vmem:[%s4319_s30 + $0x18] sm:$0xff] }
 0x38c   :  { %v498_v60 = vmax.f32 %v488_v59, 0.0  ;;  %3258 = vmatpush3.bf16.msra.mxu0 %v3255_v0 }
 0x38d   :  { %3276 = vmatprep.subr.bf16.mxu0 %v3275_v14 }
 0x38e   :  { %2930 = vmatprep.mubr.msk.f32.mxu0 %vm201_vm1, %v498_v60  ;;  %v1620_v60 = vld [vmem:[%s4319_s30 + $0x58] sm:$0xff] }
 0x38f   :  { %2931 = vmatmul.mubr.msk.f32.gmra.mrb[14].mxu0 %vm201_vm1, %v499_v61  ;;  %v1611_v61 = vld [vmem:[%s4319_s30 + $0x10] sm:$0xff] }
 0x45e   :  { %v2929_v1 = vpop.f32.mrb[12].mxu0 }
 0x45f   :  { %v582_v2 = vpop.f32.mrb[13].mxu0 }
 0x460   :  { %v3247_v3 = vpack.c.bf16 %v2929_v1, %v582_v2 }
 0x462   :  { %v2932_v4 = vpop.f32.mrb[14].mxu0  ;;  %3248 = vmatprep.subr.bf16.mxu1 %v3247_v3 }
 0x463   :  { %v592_v5 = vpop.f32.mrb[15].mxu0  ;;  %3250 = vmatpush3.bf16.msra.mxu1 %v3247_v3 }
 0x464   :  { %v3251_v6 = vpack.c.bf16 %v2932_v4, %v592_v5  ;;  %v1623_v5 = vld [vmem:[%s4319_s30 + $0x70] sm:$0xff] }
 0x466   :  { %3252 = vmatprep.subr.bf16.mxu1 %v3251_v6 }
 0x467   :  { %3254 = vmatpush3.bf16.msra.mxu1 %v3251_v6  ;;  %v1624_v6 = vld [vmem:[%s4319_s30 + $0x78] sm:$0xff] }
 0x468   :  { %3260 = vmatprep.subr.bf16.mxu1 %v3259_v10 }
 0x46a   :  { %2942 = vmatmul.mubr.msk.f32.vlgmr.msra.gmra.mrb[4].mxu1 %vm201_vm1, %v3693_v18  ;;  %v3267_v18 = vpack.c.bf16 %v798_v17, %v797_v16 }
 0x46b   :  { %2944 = vmatprep.mubr.msk.f32.mxu1 %vm201_vm1, %v3698_v19  ;;  %3262 = vmatpush3.bf16.msra.mxu1 %v3259_v10  ;;  %v799_v19 = vld [vmem:[%s4285_s18 + $0x30] sm:$0xff] }
 0x46c   :  { %3264 = vmatprep.subr.bf16.mxu1 %v3263_v15 }
 0x46e   :  { %2945 = vmatmul.mubr.msk.f32.gmra.mrb[6].mxu1 %vm201_vm1, %v3707_v20  ;;  %v800_v20 = vld [vmem:[%s4285_s18 + $0x38] sm:$0xff] }
 0x46f   :  { %3266 = vmatpush3.bf16.msra.mxu1 %v3263_v15  ;;  %v3271_v21 = vpack.c.bf16 %v800_v20, %v799_v19 }
 0x470   :  { %3268 = vmatprep.subr.bf16.mxu1 %v3267_v18 }
 0x473   :  { %3270 = vmatpush3.bf16.msra.mxu1 %v3267_v18 }
 0x474   :  { %3272 = vmatprep.subr.bf16.mxu1 %v3271_v21 }
 0x477   :  { %3274 = vmatpush3.bf16.msra.mxu1 %v3271_v21 }
 0x478   :  { %3001 = vmatprep.subr.msk.mxu1 %vm1005_vm2, %v3821_v40 }
 0x53d   :  { %v2943_v23 = vpop.f32.mrb[4].mxu1 }
 0x53e   :  { %v674_v26 = vpop.f32.mrb[5].mxu1  ;;  %v680_v28 = vadd.f32 %v2943_v23, %v2587_v22 }
 0x53f   :  { %v675_v27 = vadd.f32 %v2587_v22, %v674_v26 }
 0x541   :  { %v2946_v30 = vpop.f32.mrb[6].mxu1  ;;  %2951 = vmatprep.mubr.msk.f32.mxu0 %vm96_vm0, %v675_v27 }
 0x542   :  { %v684_v33 = vpop.f32.mrb[7].mxu1  ;;  %2952 = vmatmul.mubr.msk.f32.vlgmr.msra.gmra.mrb[16].mxu0 %vm96_vm0, %v680_v28  ;;  %v690_v35 = vadd.f32 %v2946_v30, %v2587_v22  ;;  %v1094_v30 = vld [vmem:[%s4320_s1] sm:$0xff] }
 0x543   :  { %v685_v34 = vadd.f32 %v2587_v22, %v684_v33  ;;  %3278 = vmatpush3.bf16.msra.mxu0 %v3275_v14 }
 0x544   :  { %3280 = vmatprep.subr.bf16.mxu0 %v3279_v29 }
 0x545   :  { %2954 = vmatprep.mubr.msk.f32.mxu0 %vm96_vm0, %v685_v34 }
 0x546   :  { %2955 = vmatmul.mubr.msk.f32.gmra.mrb[18].mxu0 %vm96_vm0, %v690_v35 }
 0x547   :  { %3282 = vmatpush3.bf16.msra.mxu0 %v3279_v29  ;;  %v1095_v29 = vld [vmem:[%s4320_s1 + $0x8] sm:$0xff] }
 0x548   :  { %3284 = vmatprep.subr.bf16.mxu0 %v3283_v36 }
 0x54b   :  { %3286 = vmatpush3.bf16.msra.mxu0 %v3283_v36 }
 0x54c   :  { %3288 = vmatprep.subr.bf16.mxu0 %v3287_v39 }
 0x54f   :  { %3290 = vmatpush3.bf16.msra.mxu0 %v3287_v39 }
 0x550   :  { %3009 = vmatprep.subr.msk.mxu0 %vm1005_vm2, %v3821_v40 }
 0x615   :  { %v2953_v48 = vpop.f32.mrb[16].mxu0 }
 0x616   :  { %v774_v50 = vpop.f32.mrb[17].mxu0  ;;  %v1626_v51 = vmul.f32 %v2953_v48, %v1610_v41  ;;  %v1630_v52 = vmul.f32 %v2953_v48, %v1614_v42  ;;  %v1634_v53 = vmul.f32 %v2953_v48, %v1618_v43  ;;  %v1638_v54 = vmul.f32 %v2953_v48, %v1622_v44  ;;  %v1097_v42 = vld [vmem:[%s4320_s1 + $0x18] sm:$0xff] }
 0x617   :  { %2973 = vmatprep.mubr.msk.f32.mxu1 %vm801_vm3, %v774_v50  ;;  %2995 = vmatprep.mubr.msk.f32.mxu0 %vm801_vm3, %v774_v50  ;;  %v1625_v55 = vmul.f32 %v1609_v45, %v774_v50  ;;  %v1629_v57 = vmul.f32 %v1613_v46, %v774_v50  ;;  %v1633_v59 = vmul.f32 %v1617_v47, %v774_v50 }
 0x618   :  { %2974 = vmatmul.mubr.msk.f32.vlgmr.msra.gmra.mrb[8].mxu1 %vm801_vm3, %v2953_v48  ;;  %2996 = vmatmul.mubr.msk.f32.vlgmr.msra.gmra.mrb[20].mxu0 %vm801_vm3, %v2953_v48  ;;  %v1637_v0 = vmul.f32 %v1621_v49, %v774_v50 }
 0x619   :  { %v2956_v1 = vpop.f32.mrb[18].mxu0  ;;  %3002 = vmatpush3.msk.msra.mxu1 %vm1005_vm2, %v3821_v40  ;;  %3010 = vmatpush3.msk.msra.mxu0 %vm1005_vm2, %v3821_v40  ;;  %v3877_v2 = vpack.c.bf16 %v1626_v51, %v1625_v55  ;;  %v3879_v3 = vpack.c.bf16 %v1630_v52, %v1629_v57  ;;  %v3881_v4 = vpack.c.bf16 %v1634_v53, %v1633_v59 }
 0x61a   :  { %v784_v7 = vpop.f32.mrb[19].mxu0  ;;  %3017 = vmatprep.subr.msk.mxu1 %vm1005_vm2, %v3821_v40  ;;  %v1628_v8 = vmul.f32 %v2956_v1, %v1612_v56  ;;  %v1632_v9 = vmul.f32 %v2956_v1, %v1616_v58  ;;  %v1636_v10 = vmul.f32 %v2956_v1, %v1620_v60  ;;  %v3891_v11 = vpack.c.bf16 %v1638_v54, %v1637_v0  ;;  %v1221_v60 = vld [vmem:[%s4321_s8 + $0x8] sm:$0xff] }
 0x61b   :  { %2976 = vmatprep.mubr.msk.f32.mxu1 %vm801_vm3, %v784_v7  ;;  %2998 = vmatprep.mubr.msk.f32.mxu0 %vm801_vm3, %v784_v7  ;;  %v1627_v12 = vmul.f32 %v1611_v61, %v784_v7  ;;  %v1631_v13 = vmul.f32 %v1615_v62, %v784_v7  ;;  %v1635_v14 = vmul.f32 %v1619_v63, %v784_v7  ;;  %v1220_v62 = vld [vmem:[%s4321_s8] sm:$0xff] }
 0x61c   :  { %2977 = vmatmul.mubr.msk.f32.gmra.mrb[10].mxu1 %vm801_vm3, %v2956_v1  ;;  %2999 = vmatmul.mubr.msk.f32.gmra.mrb[22].mxu0 %vm801_vm3, %v2956_v1  ;;  %v1639_v15 = vmul.f32 %v1623_v5, %v784_v7  ;;  %v1640_v16 = vmul.f32 %v2956_v1, %v1624_v6 }
 0x61d   :  { %v3897_v17 = vpack.c.bf16 %v1628_v8, %v1627_v12  ;;  %v3899_v18 = vpack.c.bf16 %v1632_v9, %v1631_v13  ;;  %v3901_v19 = vpack.c.bf16 %v1636_v10, %v1635_v14  ;;  %v1222_v14 = vld [vmem:[%s4321_s8 + $0x10] sm:$0xff] }
 0x61e   :  { %v3903_v20 = vpack.c.bf16 %v1640_v16, %v1639_v15 }
 0x6eb   :  { %v2975_v21 = vpop.f32.mrb[8].mxu1  ;;  %v2997_v22 = vpop.f32.mrb[20].mxu0 }
 0x6ec   :  { %v880_v23 = vpop.f32.mrb[9].mxu1  ;;  %v973_v24 = vpop.f32.mrb[21].mxu0 }
 0x6ed   :  { %3003 = vmatprep.mubr.msk.f32.mxu1 %vm992_vm4, %v973_v24  ;;  %3011 = vmatprep.mubr.msk.f32.mxu0 %vm992_vm4, %v880_v23 }
 0x6ee   :  { %3004 = vmatmul.mubr.msk.f32.vlgmr.msra.gmra.mrb[12].mxu1 %vm992_vm4, %v2997_v22  ;;  %3012 = vmatmul.mubr.msk.f32.vlgmr.msra.gmra.mrb[24].mxu0 %vm992_vm4, %v2975_v21 }
 0x6ef   :  { %v2978_v25 = vpop.f32.mrb[10].mxu1  ;;  %v3000_v26 = vpop.f32.mrb[22].mxu0  ;;  %3018 = vmatpush3.msk.msra.mxu1 %vm1005_vm2, %v3821_v40 }
 0x6f0   :  { %v890_v27 = vpop.f32.mrb[11].mxu1  ;;  %v983_v28 = vpop.f32.mrb[23].mxu0  ;;  %3063 = vmatprep.subr.msk.mxu1 %vm1005_vm2, %v3821_v40 }
 0x6f1   :  { %3006 = vmatprep.mubr.msk.f32.mxu1 %vm992_vm4, %v983_v28  ;;  %3014 = vmatprep.mubr.msk.f32.mxu0 %vm992_vm4, %v890_v27 }
 0x6f2   :  { %3007 = vmatmul.mubr.msk.f32.gmra.mrb[14].mxu1 %vm992_vm4, %v3000_v26  ;;  %3015 = vmatmul.mubr.msk.f32.gmra.mrb[26].mxu0 %vm992_vm4, %v2978_v25  ;;  %v1223_v25 = vld [vmem:[%s4321_s8 + $0x18] sm:$0xff] }
 0x7c1   :  { %v3005_v31 = vpop.f32.mrb[12].mxu1  ;;  %v3013_v32 = vpop.f32.mrb[24].mxu0 }
 0x7c2   :  { %v1099_v33 = vmul.f32 %v3005_v31, %v1095_v29  ;;  %v1075_v34 = vpop.f32.mrb[13].mxu1  ;;  %v1189_v35 = vpop.f32.mrb[25].mxu0 }
 0x7c3   :  { %v1098_v36 = vmul.f32 %v1094_v30, %v1075_v34 }
 0x7c5   :  { %v1102_v38 = vadd.f32 %v1099_v33, %v1098_v36  ;;  %v3008_v39 = vpop.f32.mrb[14].mxu1  ;;  %v3016_v41 = vpop.f32.mrb[26].mxu0  ;;  %v1404_v36 = vld [vmem:[%s4322_s2 + $0x8] sm:$0xff] }
 0x7c6   :  { %v1085_v43 = vpop.f32.mrb[15].mxu1  ;;  %v1199_v44 = vpop.f32.mrb[27].mxu0  ;;  %v1101_v46 = vmul.f32 %v3008_v39, %v1097_v42  ;;  %v1406_v39 = vld [vmem:[%s4322_s2 + $0x18] sm:$0xff]  ;;  %v1407_v42 = vld [vmem:[%s4322_s2 + $0x20] sm:$0xff] }
 0x7c7   :  { %v1100_v45 = vmul.f32 %v1096_v37, %v1085_v43  ;;  %v1405_v37 = vld [vmem:[%s4322_s2 + $0x10] sm:$0xff]  ;;  %v1408_v43 = vld [vmem:[%s4322_s2 + $0x28] sm:$0xff] }
 0x7c9   :  { %v1103_v47 = vadd.f32 %v1102_v38, %v1100_v45  ;;  %v1409_v45 = vld [vmem:[%s4322_s2 + $0x30] sm:$0xff] }
 0x7cb   :  { %v1104_v48 = vadd.f32 %v1103_v47, %v1101_v46  ;;  %v1410_v46 = vld [vmem:[%s4322_s2 + $0x38] sm:$0xff] }
 0x7cc   :  { %v3303_v47 = vpack.c.bf16 %v1410_v46, %v1409_v45 }
 0x7cd   :  { %v1105_v49 = vrot.slane %v1104_v48, 4 }
 0x7cf   :  { %v1106_v50 = vadd.f32 %v1105_v49, %v1104_v48 }
 0x7d1   :  { %v1107_v51 = vrot.slane %v1106_v50, 2 }
 0x7d3   :  { %v1108_v52 = vadd.f32 %v1107_v51, %v1106_v50 }
 0x7d5   :  { %v1109_v53 = vrot.slane %v1108_v52, 1 }
 0x7d7   :  { %v1110_v54 = vadd.f32 %v1109_v53, %v1108_v52 }
 0x7d9   :  { %v1190_v55 = vadd.f32 %v1189_v35, %v1110_v54  ;;  %v1195_v56 = vadd.f32 %v3013_v32, %v1110_v54  ;;  %v1200_v57 = vadd.f32 %v1199_v44, %v1110_v54  ;;  %v1205_v58 = vadd.f32 %v3016_v41, %v1110_v54  ;;  %v1403_v35 = vld [vmem:[%s4322_s2] sm:$0xff] }
 0x7da   :  { %v3291_v38 = vpack.c.bf16 %v1404_v36, %v1403_v35  ;;  %v3295_v41 = vpack.c.bf16 %v1406_v39, %v1405_v37  ;;  %v3299_v44 = vpack.c.bf16 %v1408_v43, %v1407_v42 }
 0x7db   :  { %vm1209_vm5 = vcmp.gt.f32.partialorder %v1195_v56, 0.0  ;;  %v1213_v59 = vmul.f32 0.2, %v1195_v56  ;;  %vm1208_vm6 = vcmp.gt.f32.partialorder %v1190_v55, 0.0  ;;  %v1212_v61 = vmul.f32 0.2, %v1190_v55 }
 0x7dc   :  { %v1214_v9 = vmul.f32 0.2, %v1200_v57  ;;  %vm1210_vm9 = vcmp.gt.f32.partialorder %v1200_v57, 0.0  ;;  %v1215_v16 = vmul.f32 0.2, %v1205_v58  ;;  %vm1211_vm11 = vcmp.gt.f32.partialorder %v1205_v58, 0.0  ;;  %3292 = vmatprep.subr.bf16.mxu0 %v3291_v38 }
 0x7dd   :  { %v1217_v63 = vsel %vm1209_vm5, %v1195_v56, %v1213_v59  ;;  %v1216_v1 = vsel %vm1208_vm6, %v1190_v55, %v1212_v61  ;;  %3294 = vmatpush3.bf16.msra.mxu0 %v3291_v38 }
 0x7de   :  { %v3935_v0 = vadd.f32 %v1221_v60, %v1217_v63  ;;  %v3937_v5 = vadd.f32 %v1220_v62, %v1216_v1  ;;  %v1218_v13 = vsel %vm1210_vm9, %v1200_v57, %v1214_v9  ;;  %v1219_v24 = vsel %vm1211_vm11, %v1205_v58, %v1215_v16  ;;  %3296 = vmatprep.subr.bf16.mxu0 %v3295_v41 }
 0x7df   :  { %v3954_v21 = vadd.f32 %v1222_v14, %v1218_v13  ;;  %v3965_v27 = vadd.f32 %v1223_v25, %v1219_v24  ;;  %v1413_v25 = vld [vmem:[%s4322_s2 + $0x50] sm:$0xff] }
 0x7e0   :  { %v1231_v6 = vsel %vm201_vm1, %v3935_v0, -inf  ;;  %v1228_v7 = vsel %vm201_vm1, %v3937_v5, -inf  ;;  %v1244_v8 = vsel %vm1240_vm7, %v3935_v0, -inf  ;;  %v1241_v10 = vsel %vm1240_vm7, %v3937_v5, -inf }
 0x7e1   :  { %1232 = vmax.xlane.f32.xlu1 %v1231_v6  ;;  %1229 = vmax.xlane.f32.xlu0 %v1228_v7  ;;  %v1257_v12 = vsel %vm1253_vm8, %v3935_v0, -inf  ;;  %v1254_v15 = vsel %vm1253_vm8, %v3937_v5, -inf  ;;  %v1270_v22 = vsel %vm1266_vm10, %v3935_v0, -inf  ;;  %v1267_v23 = vsel %vm1266_vm10, %v3937_v5, -inf }
 0x7e2   :  { %v1247_v26 = vsel %vm1240_vm7, %v3954_v21, -inf  ;;  %v1234_v28 = vsel %vm201_vm1, %v3954_v21, -inf  ;;  %v1250_v29 = vsel %vm1240_vm7, %v3965_v27, -inf  ;;  %v1237_v30 = vsel %vm201_vm1, %v3965_v27, -inf  ;;  %3298 = vmatpush3.bf16.msra.mxu0 %v3295_v41 }
 0x7e3   :  { %v1263_v31 = vsel %vm1253_vm8, %v3965_v27, -inf  ;;  %v1260_v32 = vsel %vm1253_vm8, %v3954_v21, -inf  ;;  %v1276_v33 = vsel %vm1266_vm10, %v3965_v27, -inf  ;;  %v1273_v34 = vsel %vm1266_vm10, %v3954_v21, -inf  ;;  %3300 = vmatprep.subr.bf16.mxu0 %v3299_v44 }
 0x7e5   :  { %1245 = vmax.xlane.f32.xlu1 %v1244_v8  ;;  %1242 = vmax.xlane.f32.xlu0 %v1241_v10 }
 0x7e6   :  { %3302 = vmatpush3.bf16.msra.mxu0 %v3299_v44 }
 0x7e7   :  { %3304 = vmatprep.subr.bf16.mxu0 %v3303_v47 }
 0x7e9   :  { %1258 = vmax.xlane.f32.xlu1 %v1257_v12  ;;  %1255 = vmax.xlane.f32.xlu0 %v1254_v15 }
 0x7ea   :  { %3306 = vmatpush3.bf16.msra.mxu0 %v3303_v47 }
 0x7ed   :  { %1271 = vmax.xlane.f32.xlu1 %v1270_v22  ;;  %1268 = vmax.xlane.f32.xlu0 %v1267_v23  ;;  %v1411_v22 = vld [vmem:[%s4322_s2 + $0x40] sm:$0xff]  ;;  %v1412_v23 = vld [vmem:[%s4322_s2 + $0x48] sm:$0xff] }
 0x7ee   :  { %v3307_v24 = vpack.c.bf16 %v1412_v23, %v1411_v22  ;;  %v1938_v22 = vld [vmem:[%s4288_s21 + $0x8] sm:$0xff] }
 0x7f0   :  { %3308 = vmatprep.subr.bf16.mxu0 %v3307_v24 }
 0x7f1   :  { %1248 = vmax.xlane.f32.xlu1 %v1247_v26  ;;  %1235 = vmax.xlane.f32.xlu0 %v1234_v28  ;;  %v1414_v26 = vld [vmem:[%s4322_s2 + $0x58] sm:$0xff] }
 0x7f2   :  { %3310 = vmatpush3.bf16.msra.mxu0 %v3307_v24  ;;  %v3311_v28 = vpack.c.bf16 %v1414_v26, %v1413_v25  ;;  %v2624_v24 = vld [vmem:[%s4286_s19] ss:$0 sm:$0xff] }
 0x7f4   :  { %3312 = vmatprep.subr.bf16.mxu0 %v3311_v28 }
 0x7f5   :  { %1251 = vmax.xlane.f32.xlu1 %v1250_v29  ;;  %1238 = vmax.xlane.f32.xlu0 %v1237_v30  ;;  %v1415_v29 = vld [vmem:[%s4322_s2 + $0x60] sm:$0xff]  ;;  %v1416_v30 = vld [vmem:[%s4322_s2 + $0x68] sm:$0xff] }
 0x7f6   :  { %3314 = vmatpush3.bf16.msra.mxu0 %v3311_v28 }
 0x7f9   :  { %1264 = vmax.xlane.f32.xlu1 %v1263_v31  ;;  %1261 = vmax.xlane.f32.xlu0 %v1260_v32  ;;  %v3315_v31 = vpack.c.bf16 %v1416_v30, %v1415_v29  ;;  %v1417_v32 = vld [vmem:[%s4322_s2 + $0x70] sm:$0xff] }
 0x7fb   :  { %3316 = vmatprep.subr.bf16.mxu0 %v3315_v31 }
 0x7fc   :  { %3318 = vmatpush3.bf16.msra.mxu0 %v3315_v31 }
 0x7fd   :  { %1277 = vmax.xlane.f32.xlu1 %v1276_v33  ;;  %1274 = vmax.xlane.f32.xlu0 %v1273_v34  ;;  %v1418_v33 = vld [vmem:[%s4322_s2 + $0x78] sm:$0xff] }
 0x7fe   :  { %v3319_v34 = vpack.c.bf16 %v1418_v33, %v1417_v32 }
 0x800   :  { %3320 = vmatprep.subr.bf16.mxu0 %v3319_v34 }
 0x801   :  { %3322 = vmatpush3.bf16.msra.mxu0 %v3319_v34 }
 0x86e   :  { %v1233_v48 = vpop.xlane.xlu1 %1232  ;;  %v1230_v49 = vpop.xlane.xlu0 %1229 }
 0x872   :  { %v1246_v50 = vpop.xlane.xlu1 %1245  ;;  %v1243_v51 = vpop.xlane.xlu0 %1242 }
 0x873   :  { %v1281_v54 = vsel %vm1279_vm12, %v1233_v48, %v1246_v50  ;;  %v1280_v55 = vsel %vm1279_vm12, %v1230_v49, %v1243_v51 }
 0x876   :  { %v1259_v52 = vpop.xlane.xlu1 %1258  ;;  %v1256_v53 = vpop.xlane.xlu0 %1255 }
 0x877   :  { %v1286_v56 = vsel %vm1284_vm13, %v1281_v54, %v1259_v52  ;;  %v1285_v58 = vsel %vm1284_vm13, %v1280_v55, %v1256_v53  ;;  %v1731_v55 = vld [vmem:[%s4323_s3 + $0x28] sm:$0xff] }
 0x87a   :  { %v1272_v57 = vpop.xlane.xlu1 %1271  ;;  %v1269_v60 = vpop.xlane.xlu0 %1268 }
 0x87b   :  { %v1291_v59 = vsel %vm1289_vm14, %v1286_v56, %v1272_v57  ;;  %v1290_v61 = vsel %vm1289_vm14, %v1285_v58, %v1269_v60  ;;  %v1732_v57 = vld [vmem:[%s4323_s3 + $0x30] sm:$0xff]  ;;  %v1733_v58 = vld [vmem:[%s4323_s3 + $0x38] sm:$0xff] }
 0x87c   :  { %3019 = vmatprep.mubr.msk.f32.mxu1 %vm992_vm4, %v1290_v61 }
 0x87d   :  { %3020 = vmatmul.mubr.msk.f32.vlgmr.msra.gmra.mrb[16].mxu1 %vm992_vm4, %v1291_v59  ;;  %v3367_v59 = vpack.c.bf16 %v1733_v58, %v1732_v57  ;;  %v2031_v57 = vld [vmem:[%s4325_s27 + $0x38] sm:$0xff]  ;;  %v2323_v58 = vld [vmem:[%s4290_s23 + $0x10] sm:$0xff] }
 0x87e   :  { %v1249_v62 = vpop.xlane.xlu1 %1248  ;;  %3064 = vmatpush3.msk.msra.mxu1 %vm1005_vm2, %v3821_v40  ;;  %v1236_v63 = vpop.xlane.xlu0 %1235 }
 0x87f   :  { %3324 = vmatprep.subr.bf16.mxu1 %v3877_v2  ;;  %v1282_v10 = vsel %vm1279_vm12, %v1236_v63, %v1249_v62 }
 0x882   :  { %v1252_v1 = vpop.xlane.xlu1 %1251  ;;  %v1239_v6 = vpop.xlane.xlu0 %1238 }
 0x883   :  { %v1283_v9 = vsel %vm1279_vm12, %v1239_v6, %v1252_v1 }
 0x886   :  { %v1265_v7 = vpop.xlane.xlu1 %1264  ;;  %v1262_v8 = vpop.xlane.xlu0 %1261 }
 0x887   :  { %v1288_v12 = vsel %vm1284_vm13, %v1283_v9, %v1265_v7  ;;  %v1287_v14 = vsel %vm1284_vm13, %v1282_v10, %v1262_v8 }
 0x88a   :  { %v1278_v13 = vpop.xlane.xlu1 %1277  ;;  %v1275_v16 = vpop.xlane.xlu0 %1274 }
 0x88b   :  { %v1293_v15 = vsel %vm1289_vm14, %v1288_v12, %v1278_v13  ;;  %v1292_v40 = vsel %vm1289_vm14, %v1287_v14, %v1275_v16  ;;  %v1838_v14 = vld [vmem:[%s4287_s20] sm:$0xff] }
 0x88c   :  { %3022 = vmatprep.mubr.msk.f32.mxu1 %vm992_vm4, %v1292_v40  ;;  %v1937_v40 = vld [vmem:[%s4288_s21] sm:$0xff]  ;;  %s4324_s21 = sld [smem:[#allocation13_spill]] }
 0x88d   :  { %3023 = vmatmul.mubr.msk.f32.gmra.mrb[18].mxu1 %vm992_vm4, %v1293_v15  ;;  %v1839_v15 = vld [vmem:[%s4287_s20 + $0x8] sm:$0xff]  ;;  %v3375_v23 = vpack.c.bf16 %v1938_v22, %v1937_v40 }
 0x88e   :  { %v3371_v16 = vpack.c.bf16 %v1839_v15, %v1838_v14 }
 0x950   :  { %v3021_v35 = vpop.f32.mrb[16].mxu1 }
 0x951   :  { %v1392_v36 = vsub.f32 %v3935_v0, %v3021_v35  ;;  %v1372_v37 = vpop.f32.mrb[17].mxu1 }
 0x952   :  { %v1391_v38 = vsub.f32 %v3937_v5, %v1372_v37 }
 0x953   :  { %v1397_v39 = vmul.f32 1.442695, %v1392_v36 }
 0x954   :  { %v1395_v41 = vmul.f32 1.442695, %v1391_v38  ;;  %v2032_v38 = vld [vmem:[%s4324_s21] sm:$0xff] }
 0x956   :  { %3415 = vpow2.f32 %v1395_v41  ;;  %v2322_v41 = vld [vmem:[%s4290_s23 + $0x8] sm:$0xff] }
 0x957   :  { %3417 = vpow2.f32 %v1397_v39  ;;  %v2321_v39 = vld [vmem:[%s4290_s23] sm:$0xff] }
 0x960   :  { %v4050_v42 = vpop.eup %3415  ;;  %v3024_v43 = vpop.f32.mrb[18].mxu1 }
 0x961   :  { %v4052_v44 = vpop.eup %3417  ;;  %v1394_v45 = vsub.f32 %v3965_v27, %v3024_v43  ;;  %v1382_v46 = vpop.f32.mrb[19].mxu1  ;;  %3057 = vmatprep.mubr.f32.mxu0 %v4050_v42 }
 0x962   :  { %v1393_v47 = vsub.f32 %v3954_v21, %v1382_v46  ;;  %3058 = vmatmul.mubr.f32.vlgmr.msra.gmra.mrb[28].mxu0 %v4052_v44 }
 0x963   :  { %v1401_v0 = vmul.f32 1.442695, %v1394_v45 }
 0x964   :  { %v1399_v5 = vmul.f32 1.442695, %v1393_v47 }
 0x966   :  { %3419 = vpow2.f32 %v1399_v5 }
 0x967   :  { %3421 = vpow2.f32 %v1401_v0 }
 0x970   :  { %v4058_v48 = vpop.eup %3419 }
 0x971   :  { %v4060_v49 = vpop.eup %3421  ;;  %3060 = vmatprep.mubr.f32.mxu0 %v4058_v48 }
 0x972   :  { %3061 = vmatmul.mubr.f32.gmra.mrb[30].mxu0 %v4060_v49 }
 0xa35   :  { %v3059_v27 = vpop.f32.mrb[28].mxu0 }
 0xa36   :  { %v1485_v50 = vpop.f32.mrb[29].mxu0 }
 0xa37   :  { %3423 = vrcp.f32 %v1485_v50 }
 0xa38   :  { %3425 = vrcp.f32 %v3059_v27 }
 0xa41   :  { %v3424_v51 = vpop.eup %3423 }
 0xa42   :  { %v3426_v21 = vpop.eup %3425  ;;  %3065 = vmatprep.mubr.msk.f32.mxu1 %vm992_vm4, %v3424_v51 }
 0xa43   :  { %3066 = vmatmul.mubr.msk.f32.vlgmr.msra.gmra.mrb[20].mxu1 %vm992_vm4, %v3426_v21  ;;  %v2033_v21 = vld [vmem:[%s4324_s21 + $0x8] sm:$0xff] }
 0xa44   :  { %3326 = vmatpush3.bf16.msra.mxu1 %v3877_v2 }
 0xa45   :  { %3328 = vmatprep.subr.bf16.mxu1 %v3897_v17  ;;  %v3062_v52 = vpop.f32.mrb[30].mxu0 }
 0xa46   :  { %v1495_v53 = vpop.f32.mrb[31].mxu0 }
 0xa47   :  { %3427 = vrcp.f32 %v1495_v53  ;;  %v2035_v53 = vld [vmem:[%s4324_s21 + $0x18] sm:$0xff] }
 0xa48   :  { %3429 = vrcp.f32 %v3062_v52  ;;  %3330 = vmatpush3.bf16.msra.mxu1 %v3897_v17  ;;  %v1728_v17 = vld [vmem:[%s4323_s3 + $0x10] sm:$0xff] }
 0xa49   :  { %3332 = vmatprep.subr.bf16.mxu1 %v3879_v3  ;;  %v2034_v52 = vld [vmem:[%s4324_s21 + $0x10] sm:$0xff] }
 0xa4c   :  { %3334 = vmatpush3.bf16.msra.mxu1 %v3879_v3  ;;  %v1726_v3 = vld [vmem:[%s4323_s3] sm:$0xff] }
 0xa4d   :  { %3336 = vmatprep.subr.bf16.mxu1 %v3899_v18 }
 0xa50   :  { %3338 = vmatpush3.bf16.msra.mxu1 %v3899_v18 }
 0xa51   :  { %v3428_v54 = vpop.eup %3427  ;;  %3340 = vmatprep.subr.bf16.mxu1 %v3881_v4 }
 0xa52   :  { %v3430_v2 = vpop.eup %3429  ;;  %3068 = vmatprep.mubr.msk.f32.mxu1 %vm992_vm4, %v3428_v54  ;;  %v2036_v54 = vld [vmem:[%s4324_s21 + $0x20] sm:$0xff] }
 0xa53   :  { %3069 = vmatmul.mubr.msk.f32.gmra.mrb[22].mxu1 %vm992_vm4, %v3430_v2  ;;  %v2037_v2 = vld [vmem:[%s4324_s21 + $0x28] sm:$0xff] }
 0xa54   :  { %3342 = vmatpush3.bf16.msra.mxu1 %v3881_v4  ;;  %v1727_v4 = vld [vmem:[%s4323_s3 + $0x8] sm:$0xff] }
 0xa55   :  { %3344 = vmatprep.subr.bf16.mxu1 %v3901_v19  ;;  %v3355_v18 = vpack.c.bf16 %v1727_v4, %v1726_v3  ;;  %v2038_v3 = vld [vmem:[%s4324_s21 + $0x30] sm:$0xff]  ;;  %v2039_v4 = vld [vmem:[%s4324_s21 + $0x38] sm:$0xff] }
 0xa57   :  { %3356 = vmatprep.subr.bf16.mxu0 %v3355_v18 }
 0xa58   :  { %3346 = vmatpush3.bf16.msra.mxu1 %v3901_v19  ;;  %3358 = vmatpush3.bf16.msra.mxu0 %v3355_v18  ;;  %v2025_v18 = vld [vmem:[%s4325_s27 + $0x8] sm:$0xff] }
 0xa59   :  { %3348 = vmatprep.subr.bf16.mxu1 %v3891_v11 }
 0xa5c   :  { %3350 = vmatpush3.bf16.msra.mxu1 %v3891_v11  ;;  %v1729_v11 = vld [vmem:[%s4323_s3 + $0x18] sm:$0xff] }
 0xa5d   :  { %3352 = vmatprep.subr.bf16.mxu1 %v3903_v20  ;;  %v3359_v19 = vpack.c.bf16 %v1729_v11, %v1728_v17  ;;  %v2024_v17 = vld [vmem:[%s4325_s27] sm:$0xff]  ;;  %v2026_v11 = vld [vmem:[%s4325_s27 + $0x10] sm:$0xff] }
 0xa5f   :  { %3360 = vmatprep.subr.bf16.mxu0 %v3359_v19 }
 0xa60   :  { %3354 = vmatpush3.bf16.msra.mxu1 %v3903_v20  ;;  %v1730_v20 = vld [vmem:[%s4323_s3 + $0x20] sm:$0xff]  ;;  %3362 = vmatpush3.bf16.msra.mxu0 %v3359_v19  ;;  %v2027_v19 = vld [vmem:[%s4325_s27 + $0x18] sm:$0xff] }
 0xa61   :  { %v3363_v56 = vpack.c.bf16 %v1731_v55, %v1730_v20  ;;  %3372 = vmatprep.subr.bf16.mxu1 %v3371_v16  ;;  %v2028_v20 = vld [vmem:[%s4325_s27 + $0x20] sm:$0xff]  ;;  %v2029_v55 = vld [vmem:[%s4325_s27 + $0x28] sm:$0xff] }
 0xa63   :  { %3364 = vmatprep.subr.bf16.mxu0 %v3363_v56 }
 0xa64   :  { %3366 = vmatpush3.bf16.msra.mxu0 %v3363_v56  ;;  %v2030_v56 = vld [vmem:[%s4325_s27 + $0x30] sm:$0xff] }
 0xa65   :  { %3368 = vmatprep.subr.bf16.mxu0 %v3367_v59 }
 0xa68   :  { %3370 = vmatpush3.bf16.msra.mxu0 %v3367_v59  ;;  %v2324_v59 = vld [vmem:[%s4290_s23 + $0x18] sm:$0xff] }
 0xa69   :  { %3376 = vmatprep.subr.bf16.mxu0 %v3375_v23 }
 0xb16   :  { %v3067_v60 = vpop.f32.mrb[20].mxu1 }
 0xb17   :  { %v1586_v61 = vpop.f32.mrb[21].mxu1  ;;  %v1606_v63 = vmul.f32 %v4052_v44, %v3067_v60  ;;  %v3399_v60 = vpack.c.bf16 %v2324_v59, %v2323_v58 }
 0xb18   :  { %v1605_v62 = vmul.f32 %v4050_v42, %v1586_v61  ;;  %v3395_v42 = vpack.c.bf16 %v2322_v41, %v2321_v39  ;;  %v2653_v61 = vld [vmem:[%s4289_s22] ss:$0 sm:$0xff]  ;;  %s3511_s22 = smov [#allocation3]  }
 0xb19   :  { %s2538_s23 = sshll.u32 %s3511_s22, 4  ;;  %s2539_s23 = int_to_ptr.vmem [resolvable:$true] %s2538_s23 }
 0xb1a   :  { %3103 = vmatprep.mubr.f32.mxu1 %v1605_v62  ;;  %s3463_s5 = scalar_lea.vmem %s2539_s23, 512  ;;  %p3468_p1 = scmp.lt.s32.totalorder %s2539_s23, %s2539_s23 }
 0xb1b   :  { %3104 = vmatmul.mubr.f32.vlgmr.msra.gmra.mrb[24].mxu1 %v1606_v63  ;;  %p3464_p0 = scmp.ne.s32.totalorder %s2539_s23, %s3463_s5  ;;  %p3469_p2 = scmp.lt.s32.totalorder %s3463_s5, %s3463_s5 }
 0xb1c   :  { %3374 = vmatpush3.bf16.msra.mxu1 %v3371_v16 }
 0xb1d   :  { %p3470_p3 = por %p3469_p2, %p3468_p1 }
 0xb1f   :  { %p3471_p4 = pnand %p3470_p3, %p3464_p0 }
 0xb26   :  { %v3070_v1 = vpop.f32.mrb[22].mxu1 }
 0xb27   :  { %v1596_v6 = vpop.f32.mrb[23].mxu1  ;;  %v1608_v8 = vmul.f32 %v4060_v49, %v3070_v1 }
 0xb28   :  { %v1607_v7 = vmul.f32 %v4058_v48, %v1596_v6 }
 0xb2a   :  { %3106 = vmatprep.mubr.f32.mxu1 %v1607_v7 }
 0xb2b   :  { %3107 = vmatmul.mubr.f32.gmra.mrb[26].mxu1 %v1608_v8 }
 0xbee   :  { %v3105_v9 = vpop.f32.mrb[24].mxu1 }
 0xbef   :  { %v1707_v10 = vpop.f32.mrb[25].mxu1 }
 0xbf0   :  { %3125 = vmatprep.mubr.msk.f32.mxu0 %vm801_vm3, %v1707_v10 }
 0xbf1   :  { %3126 = vmatmul.mubr.msk.f32.vlgmr.msra.gmra.mrb[32].mxu0 %vm801_vm3, %v3105_v9 }
 0xbf2   :  { %3378 = vmatpush3.bf16.msra.mxu0 %v3375_v23 }
 0xbf3   :  { %3396 = vmatprep.subr.bf16.mxu0 %v3395_v42 }
 0xbfe   :  { %v3108_v12 = vpop.f32.mrb[26].mxu1 }
 0xbff   :  { %v1717_v13 = vpop.f32.mrb[27].mxu1 }
 0xc00   :  { %3128 = vmatprep.mubr.msk.f32.mxu0 %vm801_vm3, %v1717_v13 }
 0xc01   :  { %3129 = vmatmul.mubr.msk.f32.gmra.mrb[34].mxu0 %vm801_vm3, %v3108_v12 }
 0xcc4   :  { %v3127_v25 = vpop.f32.mrb[32].mxu0 }
 0xcc5   :  { %v1825_v26 = vadd.f32 %v3127_v25, %v2624_v24  ;;  %v1819_v28 = vpop.f32.mrb[33].mxu0 }
 0xcc6   :  { %v1820_v29 = vadd.f32 %v2624_v24, %v1819_v28 }
 0xcc7   :  { %v2510_v30 = vsel %vm96_vm0, %v1825_v26, 0.0 }
 0xcc8   :  { %2514 = vst [vmem:[#allocation3 + $0x8] sm:$0xff] %v2510_v30  ;;  %v2509_v31 = vsel %vm96_vm0, %v1820_v29, 0.0  ;;  %3135 = vmatprep.mubr.msk.f32.mxu1 %vm96_vm0, %v1820_v29  ;;  %3145 = vmatprep.mubr.msk.f32.mxu0 %vm96_vm0, %v1820_v29 }
 0xcc9   :  { %2513 = vst [vmem:[#allocation3] sm:$0xff] %v2509_v31  ;;  %3136 = vmatmul.mubr.msk.f32.vlgmr.msra.gmra.mrb[28].mxu1 %vm96_vm0, %v1825_v26  ;;  %3146 = vmatmul.mubr.msk.f32.vlgmr.msra.gmra.mrb[36].mxu0 %vm96_vm0, %v1825_v26 }
 0xcca   :  { %3398 = vmatpush3.bf16.msra.mxu0 %v3395_v42 }
 0xccb   :  { %3400 = vmatprep.subr.bf16.mxu0 %v3399_v60 }
 0xcce   :  { %3402 = vmatpush3.bf16.msra.mxu0 %v3399_v60 }
 0xcd4   :  { %v3130_v32 = vpop.f32.mrb[34].mxu0 }
 0xcd5   :  { %v1835_v33 = vadd.f32 %v3130_v32, %v2624_v24  ;;  %v1829_v34 = vpop.f32.mrb[35].mxu0 }
 0xcd6   :  { %v1830_v35 = vadd.f32 %v2624_v24, %v1829_v34 }
 0xcd7   :  { %v2512_v36 = vsel %vm96_vm0, %v1835_v33, 0.0 }
 0xcd8   :  { %2516 = vst [vmem:[#allocation3 + $0x18] sm:$0xff] %v2512_v36  ;;  %v2511_v37 = vsel %vm96_vm0, %v1830_v35, 0.0  ;;  %3138 = vmatprep.mubr.msk.f32.mxu1 %vm96_vm0, %v1830_v35  ;;  %3148 = vmatprep.mubr.msk.f32.mxu0 %vm96_vm0, %v1830_v35 }
 0xcd9   :  { %2515 = vst [vmem:[#allocation3 + $0x10] sm:$0xff] %v2511_v37  ;;  %3139 = vmatmul.mubr.msk.f32.gmra.mrb[30].mxu1 %vm96_vm0, %v1835_v33  ;;  %3149 = vmatmul.mubr.msk.f32.gmra.mrb[38].mxu0 %vm96_vm0, %v1835_v33 }
 0xcda   :  { %3159 = vmatprep.mubr.msk.f32.mxu1 %vm201_vm1, %v2032_v38 }
 0xd9c   :  { %v3137_v43 = vpop.f32.mrb[28].mxu1  ;;  %v3147_v44 = vpop.f32.mrb[36].mxu0 }
 0xd9d   :  { %v1918_v45 = vpop.f32.mrb[29].mxu1  ;;  %v2005_v46 = vpop.f32.mrb[37].mxu0 }
 0xd9e   :  { %v3387_v47 = vpack.c.bf16 %v3137_v43, %v1918_v45  ;;  %v3379_v0 = vpack.c.bf16 %v3147_v44, %v2005_v46 }
 0xda0   :  { %3380 = vmatprep.subr.bf16.mxu1 %v3379_v0 }
 0xda1   :  { %3382 = vmatpush3.bf16.msra.mxu1 %v3379_v0 }
 0xdac   :  { %v3140_v5 = vpop.f32.mrb[30].mxu1  ;;  %v3150_v48 = vpop.f32.mrb[38].mxu0 }
 0xdad   :  { %v1928_v49 = vpop.f32.mrb[31].mxu1  ;;  %v2015_v27 = vpop.f32.mrb[39].mxu0 }
 0xdae   :  { %v3391_v50 = vpack.c.bf16 %v3140_v5, %v1928_v49  ;;  %v3383_v51 = vpack.c.bf16 %v3150_v48, %v2015_v27 }
 0xdb0   :  { %3384 = vmatprep.subr.bf16.mxu1 %v3383_v51 }
 0xdb1   :  { %3386 = vmatpush3.bf16.msra.mxu1 %v3383_v51 }
 0xdb2   :  { %3388 = vmatprep.subr.bf16.mxu1 %v3387_v47 }
 0xdb4   :  { %3160 = vmatmul.mubr.msk.f32.vlgmr.msra.gmra.mrb[32].mxu1 %vm201_vm1, %v2033_v21 }
 0xdb5   :  { %3390 = vmatpush3.bf16.msra.mxu1 %v3387_v47  ;;  %3162 = vmatprep.mubr.msk.f32.mxu1 %vm201_vm1, %v2034_v52 }
 0xdb6   :  { %3392 = vmatprep.subr.bf16.mxu1 %v3391_v50 }
 0xdb8   :  { %3163 = vmatmul.mubr.msk.f32.gmra.mrb[34].mxu1 %vm201_vm1, %v2035_v53 }
 0xdb9   :  { %3394 = vmatpush3.bf16.msra.mxu1 %v3391_v50  ;;  %3165 = vmatprep.mubr.msk.f32.mxu1 %vm201_vm1, %v2036_v54 }
 0xdbc   :  { %3166 = vmatmul.mubr.msk.f32.gmra.mrb[36].mxu1 %vm201_vm1, %v2037_v2 }
 0xdbd   :  { %3168 = vmatprep.mubr.msk.f32.mxu1 %vm201_vm1, %v2038_v3 }
 0xdc0   :  { %3169 = vmatmul.mubr.msk.f32.gmra.mrb[38].mxu1 %vm201_vm1, %v2039_v4 }
 0xdc1   :  { %3179 = vmatprep.mubr.msk.f32.mxu1 %vm201_vm1, %v2024_v17 }
 0xdc4   :  { %3180 = vmatmul.mubr.msk.f32.vlgmr.msra.gmra.mrb[32].mxu1 %vm201_vm1, %v2025_v18 }
 0xdc5   :  { %3182 = vmatprep.mubr.msk.f32.mxu1 %vm201_vm1, %v2026_v11 }
 0xdc8   :  { %3183 = vmatmul.mubr.msk.f32.gmra.mrb[34].mxu1 %vm201_vm1, %v2027_v19 }
 0xdc9   :  { %3185 = vmatprep.mubr.msk.f32.mxu1 %vm201_vm1, %v2028_v20 }
 0xdcc   :  { %3186 = vmatmul.mubr.msk.f32.gmra.mrb[36].mxu1 %vm201_vm1, %v2029_v55 }
 0xdcd   :  { %3188 = vmatprep.mubr.msk.f32.mxu1 %vm201_vm1, %v2030_v56 }
 0xdd0   :  { %3189 = vmatmul.mubr.msk.f32.gmra.mrb[38].mxu1 %vm201_vm1, %v2031_v57 }
 0xe97   :  { %v3181_v62 = vpop.f32.mrb[32].mxu1 }
 0xe98   :  { %v2306_v63 = vadd.f32 %v3181_v62, %v2653_v61  ;;  %v2259_v1 = vpop.f32.mrb[33].mxu1 }
 0xe99   :  { %v2305_v6 = vadd.f32 %v2653_v61, %v2259_v1 }
 0xe9a   :  { %v2314_v9 = vmax.f32 %v2306_v63, 0.0 }
 0xe9b   :  { %v2313_v7 = vmax.f32 %v2305_v6, 0.0  ;;  %v3184_v8 = vpop.f32.mrb[34].mxu1 }
 0xe9c   :  { %v2308_v10 = vadd.f32 %v3184_v8, %v2653_v61  ;;  %v2269_v12 = vpop.f32.mrb[35].mxu1 }
 0xe9d   :  { %v2307_v13 = vadd.f32 %v2653_v61, %v2269_v12  ;;  %3199 = vmatprep.mubr.msk.f32.mxu0 %vm201_vm1, %v2313_v7 }
 0xe9e   :  { %3200 = vmatmul.mubr.msk.f32.vlgmr.msra.gmra.mrb[40].mxu0 %vm201_vm1, %v2314_v9  ;;  %v2316_v16 = vmax.f32 %v2308_v10, 0.0 }
 0xe9f   :  { %v2315_v14 = vmax.f32 %v2307_v13, 0.0  ;;  %v3187_v15 = vpop.f32.mrb[36].mxu1 }
 0xea0   :  { %v2310_v40 = vadd.f32 %v3187_v15, %v2653_v61  ;;  %v2279_v22 = vpop.f32.mrb[37].mxu1 }
 0xea1   :  { %v2309_v23 = vadd.f32 %v2653_v61, %v2279_v22  ;;  %3202 = vmatprep.mubr.msk.f32.mxu0 %vm201_vm1, %v2315_v14 }
 0xea2   :  { %3203 = vmatmul.mubr.msk.f32.gmra.mrb[42].mxu0 %vm201_vm1, %v2316_v16  ;;  %v2318_v26 = vmax.f32 %v2310_v40, 0.0 }
 0xea3   :  { %v2317_v24 = vmax.f32 %v2309_v23, 0.0  ;;  %v3190_v25 = vpop.f32.mrb[38].mxu1 }
 0xea4   :  { %v2312_v28 = vadd.f32 %v3190_v25, %v2653_v61  ;;  %v2289_v29 = vpop.f32.mrb[39].mxu1 }
 0xea5   :  { %v2311_v30 = vadd.f32 %v2653_v61, %v2289_v29  ;;  %3205 = vmatprep.mubr.msk.f32.mxu0 %vm201_vm1, %v2317_v24 }
 0xea6   :  { %3206 = vmatmul.mubr.msk.f32.gmra.mrb[44].mxu0 %vm201_vm1, %v2318_v26  ;;  %v2320_v32 = vmax.f32 %v2312_v28, 0.0 }
 0xea7   :  { %v2319_v31 = vmax.f32 %v2311_v30, 0.0 }
 0xea9   :  { %3208 = vmatprep.mubr.msk.f32.mxu0 %vm201_vm1, %v2319_v31 }
 0xeaa   :  { %3209 = vmatmul.mubr.msk.f32.gmra.mrb[46].mxu0 %vm201_vm1, %v2320_v32 }
 0xeab   :  { %3474 = shalt.err (!%p3471_p4)
}
 0xeac   :  { %s3475_s30 = scalar_lea.hbm %s4292_s25, 512 }
 0xead   :  { %p3476_p5 = scmp.ne.s32.totalorder %s4292_s25, %s3475_s30  ;;  %p3479_p6 = scmp.lt.u32.totalorder %s3475_s30, %s4292_s25 }
 0xeaf   :  { %p3481_p7 = pnand %p3479_p6, %p3476_p5 }
 0xeb1   :  { %3484 = shalt.err (!%p3481_p7)
}
 0xeb2   :  { %s3512_s18 = smov 128   ;;  %s3513_s3 = smov 8   ;;  %v2654_v33 = vld [vmem:[#allocation2] ss:$0 sm:$0xff] }
 0xeb3   :  { %2544 = dma.vmem_to_hbm [thread:$0]  %s2539_s23, 512, %s4292_s25, [#allocation4], %s3512_s18, %s3512_s18, %s3513_s3  }
 0xeb4   :  { %s3514_s25 = smov [#allocation5]  }
 0xeb5   :  { %s2550_s21 = sshll.u32 %s3514_s25, 4  ;;  %s2551_s21 = int_to_ptr.vmem [resolvable:$true] %s2550_s21 }
 0xeb6   :  { %s3485_s15 = scalar_lea.vmem %s2551_s21, 1024  ;;  %p3490_p9 = scmp.lt.s32.totalorder %s2551_s21, %s2551_s21 }
 0xeb7   :  { %p3486_p8 = scmp.ne.s32.totalorder %s2551_s21, %s3485_s15  ;;  %p3491_p10 = scmp.lt.s32.totalorder %s3485_s15, %s3485_s15 }
 0xeb9   :  { %p3492_p11 = por %p3491_p10, %p3490_p9 }
 0xebb   :  { %p3493_p12 = pnand %p3492_p11, %p3486_p8 }
 0xf71   :  { %v3201_v34 = vpop.f32.mrb[40].mxu0 }
 0xf72   :  { %v2428_v35 = vadd.f32 %v3201_v34, %v2654_v33  ;;  %v2422_v36 = vpop.f32.mrb[41].mxu0 }
 0xf73   :  { %v2423_v37 = vadd.f32 %v2654_v33, %v2422_v36 }
 0xf74   :  { %v2664_v38 = vmul.f32 -1.442695, %v2428_v35 }
 0xf75   :  { %v2663_v39 = vmul.f32 -1.442695, %v2423_v37  ;;  %v3204_v41 = vpop.f32.mrb[42].mxu0 }
 0xf76   :  { %3431 = vpow2.f32 %v2664_v38  ;;  %v2438_v42 = vadd.f32 %v3204_v41, %v2654_v33  ;;  %v2432_v43 = vpop.f32.mrb[43].mxu0 }
 0xf77   :  { %3433 = vpow2.f32 %v2663_v39  ;;  %v2433_v44 = vadd.f32 %v2654_v33, %v2432_v43 }
 0xf78   :  { %v2666_v45 = vmul.f32 -1.442695, %v2438_v42 }
 0xf79   :  { %v2665_v46 = vmul.f32 -1.442695, %v2433_v44  ;;  %v3207_v47 = vpop.f32.mrb[44].mxu0 }
 0xf7a   :  { %3435 = vpow2.f32 %v2666_v45  ;;  %v2448_v0 = vadd.f32 %v3207_v47, %v2654_v33  ;;  %v2442_v5 = vpop.f32.mrb[45].mxu0 }
 0xf7b   :  { %3437 = vpow2.f32 %v2665_v46  ;;  %v2443_v48 = vadd.f32 %v2654_v33, %v2442_v5 }
 0xf7c   :  { %v2668_v49 = vmul.f32 -1.442695, %v2448_v0 }
 0xf7d   :  { %v2667_v27 = vmul.f32 -1.442695, %v2443_v48  ;;  %v3210_v50 = vpop.f32.mrb[46].mxu0 }
 0xf7e   :  { %3439 = vpow2.f32 %v2668_v49  ;;  %v2458_v51 = vadd.f32 %v3210_v50, %v2654_v33  ;;  %v2452_v21 = vpop.f32.mrb[47].mxu0 }
 0xf7f   :  { %3441 = vpow2.f32 %v2667_v27  ;;  %v2453_v52 = vadd.f32 %v2654_v33, %v2452_v21 }
 0xf80   :  { %v3432_v53 = vpop.eup %3431  ;;  %v2670_v54 = vmul.f32 -1.442695, %v2458_v51 }
 0xf81   :  { %v3434_v2 = vpop.eup %3433  ;;  %v2486_v3 = vadd.f32 1.0, %v3432_v53  ;;  %v2669_v4 = vmul.f32 -1.442695, %v2453_v52 }
 0xf82   :  { %v2485_v17 = vadd.f32 1.0, %v3434_v2  ;;  %3443 = vpow2.f32 %v2670_v54 }
 0xf83   :  { %3445 = vrcp.f32 %v2486_v3 }
 0xf84   :  { %v3436_v18 = vpop.eup %3435  ;;  %3447 = vrcp.f32 %v2485_v17 }
 0xf85   :  { %v3438_v11 = vpop.eup %3437  ;;  %v2488_v19 = vadd.f32 1.0, %v3436_v18  ;;  %3449 = vpow2.f32 %v2669_v4 }
 0xf86   :  { %v2487_v20 = vadd.f32 1.0, %v3438_v11 }
 0xf87   :  { %3451 = vrcp.f32 %v2488_v19 }
 0xf88   :  { %v3440_v55 = vpop.eup %3439  ;;  %3453 = vrcp.f32 %v2487_v20 }
 0xf89   :  { %v3442_v56 = vpop.eup %3441  ;;  %v2490_v57 = vadd.f32 1.0, %v3440_v55 }
 0xf8a   :  { %v2489_v58 = vadd.f32 1.0, %v3442_v56 }
 0xf8b   :  { %3455 = vrcp.f32 %v2490_v57 }
 0xf8c   :  { %v3444_v59 = vpop.eup %3443  ;;  %3457 = vrcp.f32 %v2489_v58 }
 0xf8d   :  { %v3446_v60 = vpop.eup %3445  ;;  %v2492_v61 = vadd.f32 1.0, %v3444_v59 }
 0xf8e   :  { %v3448_v62 = vpop.eup %3447  ;;  %v2518_v63 = vsel %vm1279_vm12, %v3446_v60, 0.0 }
 0xf8f   :  { %v3450_v1 = vpop.eup %3449  ;;  %2526 = vst [vmem:[#allocation5 + $0x8] sm:$0xff] %v2518_v63  ;;  %v2517_v6 = vsel %vm1279_vm12, %v3448_v62, 0.0  ;;  %3459 = vrcp.f32 %v2492_v61 }
 0xf90   :  { %2525 = vst [vmem:[#allocation5] sm:$0xff] %v2517_v6  ;;  %v2491_v7 = vadd.f32 1.0, %v3450_v1 }
 0xf91   :  { %v3452_v8 = vpop.eup %3451 }
 0xf92   :  { %v3454_v9 = vpop.eup %3453  ;;  %v2520_v10 = vsel %vm1279_vm12, %v3452_v8, 0.0  ;;  %3461 = vrcp.f32 %v2491_v7 }
 0xf93   :  { %2528 = vst [vmem:[#allocation5 + $0x18] sm:$0xff] %v2520_v10  ;;  %v2519_v12 = vsel %vm1279_vm12, %v3454_v9, 0.0 }
 0xf94   :  { %2527 = vst [vmem:[#allocation5 + $0x10] sm:$0xff] %v2519_v12 }
 0xf95   :  { %v3456_v13 = vpop.eup %3455 }
 0xf96   :  { %v3458_v14 = vpop.eup %3457  ;;  %v2522_v15 = vsel %vm1279_vm12, %v3456_v13, 0.0 }
 0xf97   :  { %2530 = vst [vmem:[#allocation5 + $0x28] sm:$0xff] %v2522_v15  ;;  %v2521_v16 = vsel %vm1279_vm12, %v3458_v14, 0.0 }
 0xf98   :  { %2529 = vst [vmem:[#allocation5 + $0x20] sm:$0xff] %v2521_v16 }
 0xf99   :  { %v3460_v40 = vpop.eup %3459 }
 0xf9a   :  { %v2524_v22 = vsel %vm1279_vm12, %v3460_v40, 0.0 }
 0xf9b   :  { %2532 = vst [vmem:[#allocation5 + $0x38] sm:$0xff] %v2524_v22 }
 0xf9c   :  { %v3462_v23 = vpop.eup %3461 }
 0xf9d   :  { %v2523_v24 = vsel %vm1279_vm12, %v3462_v23, 0.0 }
 0xf9e   :  { %2531 = vst [vmem:[#allocation5 + $0x30] sm:$0xff] %v2523_v24 }
 0xf9f   :  { %3496 = shalt.err (!%p3493_p12)
}
 0xfa0   :  { %s3497_s12 = scalar_lea.hbm %s4293_s26, 1024 }
 0xfa1   :  { %p3498_p13 = scmp.ne.s32.totalorder %s4293_s26, %s3497_s12  ;;  %p3501_p0 = scmp.lt.u32.totalorder %s3497_s12, %s4293_s26 }
 0xfa3   :  { %p3503_p1 = pnand %p3501_p0, %p3498_p13 }
 0xfa5   :  { %3506 = shalt.err (!%p3503_p1)
}
 0xfa6   :  { %2556 = dma.vmem_to_hbm [thread:$0]  %s2551_s21, 1024, %s4293_s26, [#allocation6], %s3512_s18, %s3512_s18, %s3513_s3  }
 0xfa7   :  { %3507 = dma.done.wait [#allocation4], 512  }
 0xfa8   :  { %3508 = vsyncadd [#allocation4], 4294966784 }
 0xfa9   :  { %3509 = dma.done.wait [#allocation6], 1024  }
 0xfaa   :  { %3510 = vsyncadd [#allocation6], 4294966272 }
 0xfab   :  { %2563 = vsyncpa [#allocation4], 1 }
 0xfac   :  { %2564 = vsyncpa [#allocation6], 1 }

</bundles_post_ra>
